<compile_context>
chip_gen: v7x
topology: tpu7x:2x2x1
jax: 0.10.0
libtpu: 0.0.40
codegen_flags: <defaults>
</compile_context>

<pallas_src>
import numpy as np
import jax
import jax.numpy as jnp
from jax import lax
from jax.experimental import pallas as pl
from jax.experimental.pallas import tpu as pltpu


# ----------------------------------------------------------------------------
# Fused generator kernel: whole forward pass for ONE batch element.
# ----------------------------------------------------------------------------
def _generator_kernel(z_ref, w1_ref, m2_ref, u2_ref, m3_ref, u3_ref,
                      m4_ref, u4_ref, b1_ref, b2_ref, b3_ref, b4_ref, out_ref):
    # --- Layer 1: ConvTranspose2d(L, C1, 4, stride=1, pad=0) on a 1x1 input ---
    # Dense GEMM; g1 columns are ordered (oh, ow, c1).
    g1 = jnp.dot(z_ref[0].astype(jnp.bfloat16), w1_ref[...],
                 preferred_element_type=jnp.float32)            # (1, 16*C1)
    n1 = g1.shape[1] // 4
    # Scatter the 4 per-output-row column blocks to rows -> (4, 4*C1), i.e. the
    # NHWC activation flattened as (oh, ow*C1 + c).  Pure VPU (iota+select+add).
    rows = lax.broadcasted_iota(jnp.int32, (4, n1), 0)
    y = jnp.zeros((4, n1), jnp.float32)
    for oh in range(4):
        y = y + jnp.where(rows == oh, g1[:, oh * n1:(oh + 1) * n1], 0.0)

    # --- Layers 2..4: ConvTranspose2d(Cin, Cout, 4, stride=2, pad=1) ----------
    # Previous layer's bias + ReLU is the in-kernel prologue; the width
    # overlap-add is folded into M (one bf16 MXU GEMM); the height overlap-add
    # / even-odd row interleave is four tiny f32 matmuls with the constant 0/1
    # matrices U[kh] (exact sums, so col2im adds stay f32-exact).
    for m_ref, u_ref, b_ref in ((m2_ref, u2_ref, b1_ref),
                                (m3_ref, u3_ref, b2_ref),
                                (m4_ref, u4_ref, b3_ref)):
        a = jnp.maximum(y + b_ref[...], 0.0).astype(jnp.bfloat16)   # (H, W*Cin)
        t = jnp.dot(a, m_ref[...], preferred_element_type=jnp.float32)  # (H, 4*2W*Cout)
        n = t.shape[1] // 4                                          # 2W*Cout
        y = None
        for kh in range(4):
            part = jnp.dot(u_ref[kh], t[:, kh * n:(kh + 1) * n],
                           preferred_element_type=jnp.float32)       # (2H, 2W*Cout)
            y = part if y is None else y + part

    # --- Final bias + tanh epilogue (EUP), lane-dense (32, 32*Cpad) -----------
    out_ref[0] = jnp.tanh(y + b4_ref[...])


# ----------------------------------------------------------------------------
# Host-side weight preparation (runs once).
# ----------------------------------------------------------------------------
def _width_folded_weight(w, win):
    """ConvTranspose2d weight (Cin, Cout, 4, 4), stride 2, pad 1 ->
    M (Win*Cin, 4*2*Win*Cout): kh-major column blocks; block kh maps input
    columns (w, c) to output columns (ow, d), folding the width overlap-add."""
    cin, cout, K, _ = w.shape
    wout = 2 * win
    blocks = []
    for kh in range(K):
        m = np.zeros((win * cin, wout * cout), np.float32)
        for wi in range(win):
            for kw in range(K):
                ow = 2 * wi - 1 + kw
                if 0 <= ow < wout:
                    m[wi * cin:(wi + 1) * cin,
                      ow * cout:(ow + 1) * cout] = w[:, :, kh, kw]
        blocks.append(m)
    return np.concatenate(blocks, axis=1)


def _height_scatter(hin):
    """U[kh, oh, h] = 1 iff oh == 2*h - 1 + kh (height overlap-add/interleave)."""
    hout = 2 * hin
    u = np.zeros((4, hout, hin), np.float32)
    for kh in range(4):
        for h in range(hin):
            oh = 2 * h - 1 + kh
            if 0 <= oh < hout:
                u[kh, oh, h] = 1.0
    return u


def init_generator_params(key, latent_dim, feature_maps, image_channels):
    def _wb(k, cin, cout, ksz):
        kw, kb = jax.random.split(k)
        bound = 1.0 / jnp.sqrt(float(cin * ksz * ksz))
        w = jax.random.uniform(kw, (cin, cout, ksz, ksz), jnp.float32, -bound, bound)
        b = jax.random.uniform(kb, (cout,), jnp.float32, -bound, bound)
        return w, b

    k1, k2, k3, k4 = jax.random.split(key, 4)
    w1, b1 = _wb(k1, latent_dim,       feature_maps * 4, 4)
    w2, b2 = _wb(k2, feature_maps * 4, feature_maps * 2, 4)
    w3, b3 = _wb(k3, feature_maps * 2, feature_maps,     4)
    w4, b4 = _wb(k4, feature_maps,     image_channels,   4)
    return dict(w1=w1, b1=b1, w2=w2, b2=b2, w3=w3, b3=b3, w4=w4, b4=b4)


def prep_generator_params(raw):
    """PyTorch-layout ConvTranspose2d params -> fused-kernel operands."""
    w1, w2, w3, w4 = (np.asarray(raw[k], np.float32) for k in ("w1", "w2", "w3", "w4"))
    b1, b2, b3, b4 = (np.asarray(raw[k], np.float32) for k in ("b1", "b2", "b3", "b4"))

    c_img = w4.shape[1]
    c_pad = ((c_img + 7) // 8) * 8                    # 3 -> 8: final lane width 32*8=256
    w4p = np.concatenate(
        [w4, np.zeros((w4.shape[0], c_pad - c_img, 4, 4), np.float32)], axis=1)
    b4p = np.concatenate([b4, np.zeros((c_pad - c_img,), np.float32)])

    L, c1 = w1.shape[0], w1.shape[1]
    w1m = np.transpose(w1, (0, 2, 3, 1)).reshape(L, 16 * c1)   # cols (oh, ow, c1)

    return dict(
        w1m=jnp.asarray(w1m, jnp.bfloat16),
        m2=jnp.asarray(_width_folded_weight(w2, 4),   jnp.bfloat16),
        m3=jnp.asarray(_width_folded_weight(w3, 8),   jnp.bfloat16),
        m4=jnp.asarray(_width_folded_weight(w4p, 16), jnp.bfloat16),
        u2=jnp.asarray(_height_scatter(4),  jnp.float32),
        u3=jnp.asarray(_height_scatter(8),  jnp.float32),
        u4=jnp.asarray(_height_scatter(16), jnp.float32),
        b1r=jnp.asarray(np.tile(b1, 4)[None, :],   jnp.float32),   # (1, 4*C1)
        b2r=jnp.asarray(np.tile(b2, 8)[None, :],   jnp.float32),   # (1, 8*C2)
        b3r=jnp.asarray(np.tile(b3, 16)[None, :],  jnp.float32),   # (1, 16*C3)
        b4r=jnp.asarray(np.tile(b4p, 32)[None, :], jnp.float32),   # (1, 32*Cpad)
    )


# ----------------------------------------------------------------------------
# Generator forward: one fused pallas_call, grid = (batch,).
# ----------------------------------------------------------------------------
def generator_forward(params, z, image_channels):
    B, L = z.shape
    hw = params["u4"].shape[1]                       # final spatial size (32)
    cpad = params["b4r"].shape[1] // hw              # padded image channels (8)

    weight_names = ("w1m", "m2", "u2", "m3", "u3", "m4", "u4",
                    "b1r", "b2r", "b3r", "b4r")
    weights = [params[k] for k in weight_names]

    in_specs = [pl.BlockSpec((1, 1, L), lambda b: (b, 0, 0))]
    for w in weights:
        in_specs.append(pl.BlockSpec(
            w.shape,
            (lambda b: (0, 0)) if w.ndim == 2 else (lambda b: (0, 0, 0))))

    # Advisory cost estimate.
    flops, h = 2 * L * params["w1m"].shape[1], 4
    for mk, uk in (("m2", "u2"), ("m3", "u3"), ("m4", "u4")):
        m, u = params[mk], params[uk]
        flops += 2 * h * m.shape[0] * m.shape[1]
        flops += 4 * 2 * u.shape[1] * u.shape[2] * (m.shape[1] // 4)
        h *= 2
    flops *= B
    bytes_acc = (z.size * z.dtype.itemsize + B * hw * hw * cpad * 4
                 + sum(int(w.size) * w.dtype.itemsize for w in weights))

    out = pl.pallas_call(
        _generator_kernel,
        out_shape=jax.ShapeDtypeStruct((B, hw, hw * cpad), jnp.float32),
        grid=(B,),
        in_specs=in_specs,
        out_specs=pl.BlockSpec((1, hw, hw * cpad), lambda b: (b, 0, 0)),
        compiler_params=pltpu.CompilerParams(
            dimension_semantics=("parallel",),
            vmem_limit_bytes=32 * 1024 * 1024),
        cost_estimate=pl.CostEstimate(flops=flops,
                                      transcendentals=B * hw * hw * cpad,
                                      bytes_accessed=bytes_acc),
    )(z.reshape(B, 1, L), *weights)

    # Output unpadding (8 -> image_channels) + NHWC -> NCHW: trivial one-time
    # data movement on the final image, done as XLA glue.
    img = out.reshape(B, hw, hw, cpad)[..., :image_channels]
    return jnp.transpose(img, (0, 3, 1, 2))


# ----------------------------------------------------------------------------
# Pure-JAX reference (PyTorch ConvTranspose2d semantics).
# ----------------------------------------------------------------------------
def _ref_conv_transpose(x, w, b, stride, padding):
    B, Cin, H, W = x.shape
    _, Cout, K, _ = w.shape
    OH = (H - 1) * stride - 2 * padding + K
    OW = (W - 1) * stride - 2 * padding + K
    up = jnp.zeros((B, Cin, (H - 1) * stride + 1, (W - 1) * stride + 1), x.dtype)
    up = up.at[:, :, ::stride, ::stride].set(x)
    p = K - 1 - padding
    xp = jnp.pad(up, ((0, 0), (0, 0), (p, p), (p, p)))
    wf = w[:, :, ::-1, ::-1]
    out = jnp.zeros((B, Cout, OH, OW), jnp.float32)
    for kh in range(K):
        for kw in range(K):
            out = out + jnp.einsum("bchw,cd->bdhw",
                                   xp[:, :, kh:kh + OH, kw:kw + OW], wf[:, :, kh, kw])
    return out + b[None, :, None, None]


def reference_forward(raw, z):
    x = z[:, :, None, None]
    x = jnp.maximum(_ref_conv_transpose(x, raw["w1"], raw["b1"], 1, 0), 0.0)
    x = jnp.maximum(_ref_conv_transpose(x, raw["w2"], raw["b2"], 2, 1), 0.0)
    x = jnp.maximum(_ref_conv_transpose(x, raw["w3"], raw["b3"], 2, 1), 0.0)
    return jnp.tanh(_ref_conv_transpose(x, raw["w4"], raw["b4"], 2, 1))


if __name__ == "__main__":
    latent_dim, feature_maps, image_channels, batch = 32, 8, 3, 2

    key = jax.random.PRNGKey(0)
    pkey, zkey = jax.random.split(key)
    raw = init_generator_params(pkey, latent_dim, feature_maps, image_channels)
    params = prep_generator_params(raw)
    z = jax.random.normal(zkey, (batch, latent_dim), jnp.float32)

    fwd = jax.jit(lambda p, zz: generator_forward(p, zz, image_channels))
    out = jax.block_until_ready(fwd(params, z))

    ref = jax.block_until_ready(jax.jit(reference_forward)(raw, z))

    assert out.shape == (batch, image_channels, 32, 32), out.shape
    assert bool(jnp.all(jnp.isfinite(out)))
    assert bool(jnp.all(jnp.abs(out) <= 1.0 + 1e-6))          # tanh output range
    assert bool(jnp.allclose(out, ref, atol=2e-2, rtol=0.0)), \
        float(jnp.max(jnp.abs(out - ref)))                    # bf16-MXU tolerance
    print("KERNEL_OK")
</pallas_src>

<mosaic_0001>
module attributes {stable_mosaic.version = 11 : i64} {
  func.func @_generator_kernel(%arg0: i32, %arg1: memref<1x1x32xf32, #tpu.memory_space<vmem>>, %arg2: memref<32x512xbf16, #tpu.memory_space<vmem>>, %arg3: memref<128x512xbf16, #tpu.memory_space<vmem>>, %arg4: memref<4x8x4xf32, #tpu.memory_space<vmem>>, %arg5: memref<128x512xbf16, #tpu.memory_space<vmem>>, %arg6: memref<4x16x8xf32, #tpu.memory_space<vmem>>, %arg7: memref<128x1024xbf16, #tpu.memory_space<vmem>>, %arg8: memref<4x32x16xf32, #tpu.memory_space<vmem>>, %arg9: memref<1x128xf32, #tpu.memory_space<vmem>>, %arg10: memref<1x128xf32, #tpu.memory_space<vmem>>, %arg11: memref<1x128xf32, #tpu.memory_space<vmem>>, %arg12: memref<1x256xf32, #tpu.memory_space<vmem>>, %arg13: memref<1x32x256xf32, #tpu.memory_space<vmem>>) attributes {dimension_semantics = [#tpu.dimension_semantics<parallel>], iteration_bounds = array<i64: 2>, scalar_prefetch = 0 : i64, scratch_operands = 0 : i64, tpu.core_type = #tpu.core_type<tc>, window_params = [{transform_indices = @transform_0, window_bounds = array<i64: 1, 1, 32>}, {pipeline_mode = #tpu.pipeline_mode<synchronous>, transform_indices = @transform_1, window_bounds = array<i64: 32, 512>}, {pipeline_mode = #tpu.pipeline_mode<synchronous>, transform_indices = @transform_2, window_bounds = array<i64: 128, 512>}, {pipeline_mode = #tpu.pipeline_mode<synchronous>, transform_indices = @transform_3, window_bounds = array<i64: 4, 8, 4>}, {pipeline_mode = #tpu.pipeline_mode<synchronous>, transform_indices = @transform_4, window_bounds = array<i64: 128, 512>}, {pipeline_mode = #tpu.pipeline_mode<synchronous>, transform_indices = @transform_5, window_bounds = array<i64: 4, 16, 8>}, {pipeline_mode = #tpu.pipeline_mode<synchronous>, transform_indices = @transform_6, window_bounds = array<i64: 128, 1024>}, {pipeline_mode = #tpu.pipeline_mode<synchronous>, transform_indices = @transform_7, window_bounds = array<i64: 4, 32, 16>}, {pipeline_mode = #tpu.pipeline_mode<synchronous>, transform_indices = @transform_8, window_bounds = array<i64: 1, 128>}, {pipeline_mode = #tpu.pipeline_mode<synchronous>, transform_indices = @transform_9, window_bounds = array<i64: 1, 128>}, {pipeline_mode = #tpu.pipeline_mode<synchronous>, transform_indices = @transform_10, window_bounds = array<i64: 1, 128>}, {pipeline_mode = #tpu.pipeline_mode<synchronous>, transform_indices = @transform_11, window_bounds = array<i64: 1, 256>}, {transform_indices = @transform_12, window_bounds = array<i64: 1, 32, 256>}]} {
    %c0 = arith.constant 0 : index
    %c0_0 = arith.constant 0 : index
    %c0_1 = arith.constant 0 : index
    %0 = vector.load %arg1[%c0, %c0_0, %c0_1] : memref<1x1x32xf32, #tpu.memory_space<vmem>>, vector<1x1x32xf32>
    %1 = vector.shape_cast %0 : vector<1x1x32xf32> to vector<1x32xf32>
    %2 = arith.truncf %1 : vector<1x32xf32> to vector<1x32xbf16>
    %c0_2 = arith.constant 0 : index
    %c0_3 = arith.constant 0 : index
    %3 = vector.load %arg2[%c0_2, %c0_3] : memref<32x512xbf16, #tpu.memory_space<vmem>>, vector<32x512xbf16>
    %cst = arith.constant dense<0.000000e+00> : vector<1x512xf32>
    %4 = tpu.matmul %2, %3, %cst {dimension_numbers = #tpu.dot_dimension_numbers<[1], [0], [0], [1], [0, 0, 1, 1], [], []>} : vector<1x32xbf16>, vector<32x512xbf16>, vector<1x512xf32> -> vector<1x512xf32>
    %5 = tpu.iota {dimensions = array<i32: 0>} : vector<4x128xi32>
    %cst_4 = arith.constant 0.000000e+00 : f32
    %6 = vector.broadcast %cst_4 : f32 to vector<4x128xf32>
    %c0_i32 = arith.constant 0 : i32
    %7 = vector.broadcast %c0_i32 : i32 to vector<4x128xi32>
    %8 = arith.cmpi eq, %5, %7 : vector<4x128xi32>
    %9 = vector.extract_strided_slice %4 {offsets = [0, 0], sizes = [1, 128], strides = [1, 1]} : vector<1x512xf32> to vector<1x128xf32>
    %cst_5 = arith.constant 0.000000e+00 : f32
    %10 = vector.shape_cast %9 : vector<1x128xf32> to vector<1x128xf32>
    %11 = vector.broadcast %10 : vector<1x128xf32> to vector<4x128xf32>
    %12 = vector.broadcast %cst_5 : f32 to vector<4x128xf32>
    %13 = arith.select %8, %11, %12 : vector<4x128xi1>, vector<4x128xf32>
    %14 = arith.addf %6, %13 : vector<4x128xf32>
    %c1_i32 = arith.constant 1 : i32
    %15 = vector.broadcast %c1_i32 : i32 to vector<4x128xi32>
    %16 = arith.cmpi eq, %5, %15 : vector<4x128xi32>
    %17 = vector.extract_strided_slice %4 {offsets = [0, 128], sizes = [1, 128], strides = [1, 1]} : vector<1x512xf32> to vector<1x128xf32>
    %cst_6 = arith.constant 0.000000e+00 : f32
    %18 = vector.shape_cast %17 : vector<1x128xf32> to vector<1x128xf32>
    %19 = vector.broadcast %18 : vector<1x128xf32> to vector<4x128xf32>
    %20 = vector.broadcast %cst_6 : f32 to vector<4x128xf32>
    %21 = arith.select %16, %19, %20 : vector<4x128xi1>, vector<4x128xf32>
    %22 = arith.addf %14, %21 : vector<4x128xf32>
    %c2_i32 = arith.constant 2 : i32
    %23 = vector.broadcast %c2_i32 : i32 to vector<4x128xi32>
    %24 = arith.cmpi eq, %5, %23 : vector<4x128xi32>
    %25 = vector.extract_strided_slice %4 {offsets = [0, 256], sizes = [1, 128], strides = [1, 1]} : vector<1x512xf32> to vector<1x128xf32>
    %cst_7 = arith.constant 0.000000e+00 : f32
    %26 = vector.shape_cast %25 : vector<1x128xf32> to vector<1x128xf32>
    %27 = vector.broadcast %26 : vector<1x128xf32> to vector<4x128xf32>
    %28 = vector.broadcast %cst_7 : f32 to vector<4x128xf32>
    %29 = arith.select %24, %27, %28 : vector<4x128xi1>, vector<4x128xf32>
    %30 = arith.addf %22, %29 : vector<4x128xf32>
    %c3_i32 = arith.constant 3 : i32
    %31 = vector.broadcast %c3_i32 : i32 to vector<4x128xi32>
    %32 = arith.cmpi eq, %5, %31 : vector<4x128xi32>
    %33 = vector.extract_strided_slice %4 {offsets = [0, 384], sizes = [1, 128], strides = [1, 1]} : vector<1x512xf32> to vector<1x128xf32>
    %cst_8 = arith.constant 0.000000e+00 : f32
    %34 = vector.shape_cast %33 : vector<1x128xf32> to vector<1x128xf32>
    %35 = vector.broadcast %34 : vector<1x128xf32> to vector<4x128xf32>
    %36 = vector.broadcast %cst_8 : f32 to vector<4x128xf32>
    %37 = arith.select %32, %35, %36 : vector<4x128xi1>, vector<4x128xf32>
    %38 = arith.addf %30, %37 : vector<4x128xf32>
    %c0_9 = arith.constant 0 : index
    %c0_10 = arith.constant 0 : index
    %39 = vector.load %arg9[%c0_9, %c0_10] : memref<1x128xf32, #tpu.memory_space<vmem>>, vector<1x128xf32>
    %40 = vector.broadcast %39 : vector<1x128xf32> to vector<4x128xf32>
    %41 = arith.addf %38, %40 : vector<4x128xf32>
    %cst_11 = arith.constant 0.000000e+00 : f32
    %42 = vector.broadcast %cst_11 : f32 to vector<4x128xf32>
    %43 = arith.maximumf %41, %42 : vector<4x128xf32>
    %44 = arith.truncf %43 : vector<4x128xf32> to vector<4x128xbf16>
    %c0_12 = arith.constant 0 : index
    %c0_13 = arith.constant 0 : index
    %45 = vector.load %arg3[%c0_12, %c0_13] : memref<128x512xbf16, #tpu.memory_space<vmem>>, vector<128x512xbf16>
    %cst_14 = arith.constant dense<0.000000e+00> : vector<4x512xf32>
    %46 = tpu.matmul %44, %45, %cst_14 {dimension_numbers = #tpu.dot_dimension_numbers<[1], [0], [0], [1], [0, 0, 1, 1], [], []>} : vector<4x128xbf16>, vector<128x512xbf16>, vector<4x512xf32> -> vector<4x512xf32>
    %c0_15 = arith.constant 0 : index
    %c0_16 = arith.constant 0 : index
    %c0_17 = arith.constant 0 : index
    %47 = vector.load %arg4[%c0_15, %c0_16, %c0_17] : memref<4x8x4xf32, #tpu.memory_space<vmem>>, vector<1x8x4xf32>
    %48 = vector.shape_cast %47 : vector<1x8x4xf32> to vector<8x4xf32>
    %49 = vector.extract_strided_slice %46 {offsets = [0, 0], sizes = [4, 128], strides = [1, 1]} : vector<4x512xf32> to vector<4x128xf32>
    %cst_18 = arith.constant dense<0.000000e+00> : vector<8x128xf32>
    %50 = tpu.matmul %48, %49, %cst_18 {dimension_numbers = #tpu.dot_dimension_numbers<[1], [0], [0], [1], [0, 0, 1, 1], [], []>} : vector<8x4xf32>, vector<4x128xf32>, vector<8x128xf32> -> vector<8x128xf32>
    %c1 = arith.constant 1 : index
    %c0_19 = arith.constant 0 : index
    %c0_20 = arith.constant 0 : index
    %51 = vector.load %arg4[%c1, %c0_19, %c0_20] : memref<4x8x4xf32, #tpu.memory_space<vmem>>, vector<1x8x4xf32>
    %52 = vector.shape_cast %51 : vector<1x8x4xf32> to vector<8x4xf32>
    %53 = vector.extract_strided_slice %46 {offsets = [0, 128], sizes = [4, 128], strides = [1, 1]} : vector<4x512xf32> to vector<4x128xf32>
    %cst_21 = arith.constant dense<0.000000e+00> : vector<8x128xf32>
    %54 = tpu.matmul %52, %53, %cst_21 {dimension_numbers = #tpu.dot_dimension_numbers<[1], [0], [0], [1], [0, 0, 1, 1], [], []>} : vector<8x4xf32>, vector<4x128xf32>, vector<8x128xf32> -> vector<8x128xf32>
    %55 = arith.addf %50, %54 : vector<8x128xf32>
    %c2 = arith.constant 2 : index
    %c0_22 = arith.constant 0 : index
    %c0_23 = arith.constant 0 : index
    %56 = vector.load %arg4[%c2, %c0_22, %c0_23] : memref<4x8x4xf32, #tpu.memory_space<vmem>>, vector<1x8x4xf32>
    %57 = vector.shape_cast %56 : vector<1x8x4xf32> to vector<8x4xf32>
    %58 = vector.extract_strided_slice %46 {offsets = [0, 256], sizes = [4, 128], strides = [1, 1]} : vector<4x512xf32> to vector<4x128xf32>
    %cst_24 = arith.constant dense<0.000000e+00> : vector<8x128xf32>
    %59 = tpu.matmul %57, %58, %cst_24 {dimension_numbers = #tpu.dot_dimension_numbers<[1], [0], [0], [1], [0, 0, 1, 1], [], []>} : vector<8x4xf32>, vector<4x128xf32>, vector<8x128xf32> -> vector<8x128xf32>
    %60 = arith.addf %55, %59 : vector<8x128xf32>
    %c3 = arith.constant 3 : index
    %c0_25 = arith.constant 0 : index
    %c0_26 = arith.constant 0 : index
    %61 = vector.load %arg4[%c3, %c0_25, %c0_26] : memref<4x8x4xf32, #tpu.memory_space<vmem>>, vector<1x8x4xf32>
    %62 = vector.shape_cast %61 : vector<1x8x4xf32> to vector<8x4xf32>
    %63 = vector.extract_strided_slice %46 {offsets = [0, 384], sizes = [4, 128], strides = [1, 1]} : vector<4x512xf32> to vector<4x128xf32>
    %cst_27 = arith.constant dense<0.000000e+00> : vector<8x128xf32>
    %64 = tpu.matmul %62, %63, %cst_27 {dimension_numbers = #tpu.dot_dimension_numbers<[1], [0], [0], [1], [0, 0, 1, 1], [], []>} : vector<8x4xf32>, vector<4x128xf32>, vector<8x128xf32> -> vector<8x128xf32>
    %65 = arith.addf %60, %64 : vector<8x128xf32>
    %c0_28 = arith.constant 0 : index
    %c0_29 = arith.constant 0 : index
    %66 = vector.load %arg10[%c0_28, %c0_29] : memref<1x128xf32, #tpu.memory_space<vmem>>, vector<1x128xf32>
    %67 = vector.broadcast %66 : vector<1x128xf32> to vector<8x128xf32>
    %68 = arith.addf %65, %67 : vector<8x128xf32>
    %cst_30 = arith.constant 0.000000e+00 : f32
    %69 = vector.broadcast %cst_30 : f32 to vector<8x128xf32>
    %70 = arith.maximumf %68, %69 : vector<8x128xf32>
    %71 = arith.truncf %70 : vector<8x128xf32> to vector<8x128xbf16>
    %c0_31 = arith.constant 0 : index
    %c0_32 = arith.constant 0 : index
    %72 = vector.load %arg5[%c0_31, %c0_32] : memref<128x512xbf16, #tpu.memory_space<vmem>>, vector<128x512xbf16>
    %cst_33 = arith.constant dense<0.000000e+00> : vector<8x512xf32>
    %73 = tpu.matmul %71, %72, %cst_33 {dimension_numbers = #tpu.dot_dimension_numbers<[1], [0], [0], [1], [0, 0, 1, 1], [], []>} : vector<8x128xbf16>, vector<128x512xbf16>, vector<8x512xf32> -> vector<8x512xf32>
    %c0_34 = arith.constant 0 : index
    %c0_35 = arith.constant 0 : index
    %c0_36 = arith.constant 0 : index
    %74 = vector.load %arg6[%c0_34, %c0_35, %c0_36] : memref<4x16x8xf32, #tpu.memory_space<vmem>>, vector<1x16x8xf32>
    %75 = vector.shape_cast %74 : vector<1x16x8xf32> to vector<16x8xf32>
    %76 = vector.extract_strided_slice %73 {offsets = [0, 0], sizes = [8, 128], strides = [1, 1]} : vector<8x512xf32> to vector<8x128xf32>
    %cst_37 = arith.constant dense<0.000000e+00> : vector<16x128xf32>
    %77 = tpu.matmul %75, %76, %cst_37 {dimension_numbers = #tpu.dot_dimension_numbers<[1], [0], [0], [1], [0, 0, 1, 1], [], []>} : vector<16x8xf32>, vector<8x128xf32>, vector<16x128xf32> -> vector<16x128xf32>
    %c1_38 = arith.constant 1 : index
    %c0_39 = arith.constant 0 : index
    %c0_40 = arith.constant 0 : index
    %78 = vector.load %arg6[%c1_38, %c0_39, %c0_40] : memref<4x16x8xf32, #tpu.memory_space<vmem>>, vector<1x16x8xf32>
    %79 = vector.shape_cast %78 : vector<1x16x8xf32> to vector<16x8xf32>
    %80 = vector.extract_strided_slice %73 {offsets = [0, 128], sizes = [8, 128], strides = [1, 1]} : vector<8x512xf32> to vector<8x128xf32>
    %cst_41 = arith.constant dense<0.000000e+00> : vector<16x128xf32>
    %81 = tpu.matmul %79, %80, %cst_41 {dimension_numbers = #tpu.dot_dimension_numbers<[1], [0], [0], [1], [0, 0, 1, 1], [], []>} : vector<16x8xf32>, vector<8x128xf32>, vector<16x128xf32> -> vector<16x128xf32>
    %82 = arith.addf %77, %81 : vector<16x128xf32>
    %c2_42 = arith.constant 2 : index
    %c0_43 = arith.constant 0 : index
    %c0_44 = arith.constant 0 : index
    %83 = vector.load %arg6[%c2_42, %c0_43, %c0_44] : memref<4x16x8xf32, #tpu.memory_space<vmem>>, vector<1x16x8xf32>
    %84 = vector.shape_cast %83 : vector<1x16x8xf32> to vector<16x8xf32>
    %85 = vector.extract_strided_slice %73 {offsets = [0, 256], sizes = [8, 128], strides = [1, 1]} : vector<8x512xf32> to vector<8x128xf32>
    %cst_45 = arith.constant dense<0.000000e+00> : vector<16x128xf32>
    %86 = tpu.matmul %84, %85, %cst_45 {dimension_numbers = #tpu.dot_dimension_numbers<[1], [0], [0], [1], [0, 0, 1, 1], [], []>} : vector<16x8xf32>, vector<8x128xf32>, vector<16x128xf32> -> vector<16x128xf32>
    %87 = arith.addf %82, %86 : vector<16x128xf32>
    %c3_46 = arith.constant 3 : index
    %c0_47 = arith.constant 0 : index
    %c0_48 = arith.constant 0 : index
    %88 = vector.load %arg6[%c3_46, %c0_47, %c0_48] : memref<4x16x8xf32, #tpu.memory_space<vmem>>, vector<1x16x8xf32>
    %89 = vector.shape_cast %88 : vector<1x16x8xf32> to vector<16x8xf32>
    %90 = vector.extract_strided_slice %73 {offsets = [0, 384], sizes = [8, 128], strides = [1, 1]} : vector<8x512xf32> to vector<8x128xf32>
    %cst_49 = arith.constant dense<0.000000e+00> : vector<16x128xf32>
    %91 = tpu.matmul %89, %90, %cst_49 {dimension_numbers = #tpu.dot_dimension_numbers<[1], [0], [0], [1], [0, 0, 1, 1], [], []>} : vector<16x8xf32>, vector<8x128xf32>, vector<16x128xf32> -> vector<16x128xf32>
    %92 = arith.addf %87, %91 : vector<16x128xf32>
    %c0_50 = arith.constant 0 : index
    %c0_51 = arith.constant 0 : index
    %93 = vector.load %arg11[%c0_50, %c0_51] : memref<1x128xf32, #tpu.memory_space<vmem>>, vector<1x128xf32>
    %94 = vector.broadcast %93 : vector<1x128xf32> to vector<16x128xf32>
    %95 = arith.addf %92, %94 : vector<16x128xf32>
    %cst_52 = arith.constant 0.000000e+00 : f32
    %96 = vector.broadcast %cst_52 : f32 to vector<16x128xf32>
    %97 = arith.maximumf %95, %96 : vector<16x128xf32>
    %98 = arith.truncf %97 : vector<16x128xf32> to vector<16x128xbf16>
    %c0_53 = arith.constant 0 : index
    %c0_54 = arith.constant 0 : index
    %99 = vector.load %arg7[%c0_53, %c0_54] : memref<128x1024xbf16, #tpu.memory_space<vmem>>, vector<128x1024xbf16>
    %cst_55 = arith.constant dense<0.000000e+00> : vector<16x1024xf32>
    %100 = tpu.matmul %98, %99, %cst_55 {dimension_numbers = #tpu.dot_dimension_numbers<[1], [0], [0], [1], [0, 0, 1, 1], [], []>} : vector<16x128xbf16>, vector<128x1024xbf16>, vector<16x1024xf32> -> vector<16x1024xf32>
    %c0_56 = arith.constant 0 : index
    %c0_57 = arith.constant 0 : index
    %c0_58 = arith.constant 0 : index
    %101 = vector.load %arg8[%c0_56, %c0_57, %c0_58] : memref<4x32x16xf32, #tpu.memory_space<vmem>>, vector<1x32x16xf32>
    %102 = vector.shape_cast %101 : vector<1x32x16xf32> to vector<32x16xf32>
    %103 = vector.extract_strided_slice %100 {offsets = [0, 0], sizes = [16, 256], strides = [1, 1]} : vector<16x1024xf32> to vector<16x256xf32>
    %cst_59 = arith.constant dense<0.000000e+00> : vector<32x256xf32>
    %104 = tpu.matmul %102, %103, %cst_59 {dimension_numbers = #tpu.dot_dimension_numbers<[1], [0], [0], [1], [0, 0, 1, 1], [], []>} : vector<32x16xf32>, vector<16x256xf32>, vector<32x256xf32> -> vector<32x256xf32>
    %c1_60 = arith.constant 1 : index
    %c0_61 = arith.constant 0 : index
    %c0_62 = arith.constant 0 : index
    %105 = vector.load %arg8[%c1_60, %c0_61, %c0_62] : memref<4x32x16xf32, #tpu.memory_space<vmem>>, vector<1x32x16xf32>
    %106 = vector.shape_cast %105 : vector<1x32x16xf32> to vector<32x16xf32>
    %107 = vector.extract_strided_slice %100 {offsets = [0, 256], sizes = [16, 256], strides = [1, 1]} : vector<16x1024xf32> to vector<16x256xf32>
    %cst_63 = arith.constant dense<0.000000e+00> : vector<32x256xf32>
    %108 = tpu.matmul %106, %107, %cst_63 {dimension_numbers = #tpu.dot_dimension_numbers<[1], [0], [0], [1], [0, 0, 1, 1], [], []>} : vector<32x16xf32>, vector<16x256xf32>, vector<32x256xf32> -> vector<32x256xf32>
    %109 = arith.addf %104, %108 : vector<32x256xf32>
    %c2_64 = arith.constant 2 : index
    %c0_65 = arith.constant 0 : index
    %c0_66 = arith.constant 0 : index
    %110 = vector.load %arg8[%c2_64, %c0_65, %c0_66] : memref<4x32x16xf32, #tpu.memory_space<vmem>>, vector<1x32x16xf32>
    %111 = vector.shape_cast %110 : vector<1x32x16xf32> to vector<32x16xf32>
    %112 = vector.extract_strided_slice %100 {offsets = [0, 512], sizes = [16, 256], strides = [1, 1]} : vector<16x1024xf32> to vector<16x256xf32>
    %cst_67 = arith.constant dense<0.000000e+00> : vector<32x256xf32>
    %113 = tpu.matmul %111, %112, %cst_67 {dimension_numbers = #tpu.dot_dimension_numbers<[1], [0], [0], [1], [0, 0, 1, 1], [], []>} : vector<32x16xf32>, vector<16x256xf32>, vector<32x256xf32> -> vector<32x256xf32>
    %114 = arith.addf %109, %113 : vector<32x256xf32>
    %c3_68 = arith.constant 3 : index
    %c0_69 = arith.constant 0 : index
    %c0_70 = arith.constant 0 : index
    %115 = vector.load %arg8[%c3_68, %c0_69, %c0_70] : memref<4x32x16xf32, #tpu.memory_space<vmem>>, vector<1x32x16xf32>
    %116 = vector.shape_cast %115 : vector<1x32x16xf32> to vector<32x16xf32>
    %117 = vector.extract_strided_slice %100 {offsets = [0, 768], sizes = [16, 256], strides = [1, 1]} : vector<16x1024xf32> to vector<16x256xf32>
    %cst_71 = arith.constant dense<0.000000e+00> : vector<32x256xf32>
    %118 = tpu.matmul %116, %117, %cst_71 {dimension_numbers = #tpu.dot_dimension_numbers<[1], [0], [0], [1], [0, 0, 1, 1], [], []>} : vector<32x16xf32>, vector<16x256xf32>, vector<32x256xf32> -> vector<32x256xf32>
    %119 = arith.addf %114, %118 : vector<32x256xf32>
    %c0_72 = arith.constant 0 : index
    %c0_73 = arith.constant 0 : index
    %120 = vector.load %arg12[%c0_72, %c0_73] : memref<1x256xf32, #tpu.memory_space<vmem>>, vector<1x256xf32>
    %121 = vector.broadcast %120 : vector<1x256xf32> to vector<32x256xf32>
    %122 = arith.addf %119, %121 : vector<32x256xf32>
    %123 = math.tanh %122 : vector<32x256xf32>
    %c0_74 = arith.constant 0 : index
    %c0_75 = arith.constant 0 : index
    %c0_76 = arith.constant 0 : index
    %124 = vector.load %arg13[%c0_74, %c0_75, %c0_76] : memref<1x32x256xf32, #tpu.memory_space<vmem>>, vector<1x32x256xf32>
    %125 = vector.shape_cast %124 : vector<1x32x256xf32> to vector<32x256xf32>
    %126 = vector.shape_cast %123 : vector<32x256xf32> to vector<1x32x256xf32>
    tpu.vector_store %arg13[%c0_74, %c0_75, %c0_76], %126 {strides = array<i32>} : memref<1x32x256xf32, #tpu.memory_space<vmem>>, vector<1x32x256xf32>,
    return
  }
  func.func @transform_0(%arg0: i32) -> (i32, i32, i32) {
    %c0_i32 = arith.constant 0 : i32
    %c0_i32_0 = arith.constant 0 : i32
    %c0_i32_1 = arith.constant 0 : i32
    return %arg0, %c0_i32, %c0_i32_0 : i32, i32, i32
  }
  func.func @transform_1(%arg0: i32) -> (i32, i32) {
    %c0_i32 = arith.constant 0 : i32
    %c0_i32_0 = arith.constant 0 : i32
    %c0_i32_1 = arith.constant 0 : i32
    return %c0_i32, %c0_i32_0 : i32, i32
  }
  func.func @transform_2(%arg0: i32) -> (i32, i32) {
    %c0_i32 = arith.constant 0 : i32
    %c0_i32_0 = arith.constant 0 : i32
    %c0_i32_1 = arith.constant 0 : i32
    return %c0_i32, %c0_i32_0 : i32, i32
  }
  func.func @transform_3(%arg0: i32) -> (i32, i32, i32) {
    %c0_i32 = arith.constant 0 : i32
    %c0_i32_0 = arith.constant 0 : i32
    %c0_i32_1 = arith.constant 0 : i32
    %c0_i32_2 = arith.constant 0 : i32
    return %c0_i32, %c0_i32_0, %c0_i32_1 : i32, i32, i32
  }
  func.func @transform_4(%arg0: i32) -> (i32, i32) {
    %c0_i32 = arith.constant 0 : i32
    %c0_i32_0 = arith.constant 0 : i32
    %c0_i32_1 = arith.constant 0 : i32
    return %c0_i32, %c0_i32_0 : i32, i32
  }
  func.func @transform_5(%arg0: i32) -> (i32, i32, i32) {
    %c0_i32 = arith.constant 0 : i32
    %c0_i32_0 = arith.constant 0 : i32
    %c0_i32_1 = arith.constant 0 : i32
    %c0_i32_2 = arith.constant 0 : i32
    return %c0_i32, %c0_i32_0, %c0_i32_1 : i32, i32, i32
  }
  func.func @transform_6(%arg0: i32) -> (i32, i32) {
    %c0_i32 = arith.constant 0 : i32
    %c0_i32_0 = arith.constant 0 : i32
    %c0_i32_1 = arith.constant 0 : i32
    return %c0_i32, %c0_i32_0 : i32, i32
  }
  func.func @transform_7(%arg0: i32) -> (i32, i32, i32) {
    %c0_i32 = arith.constant 0 : i32
    %c0_i32_0 = arith.constant 0 : i32
    %c0_i32_1 = arith.constant 0 : i32
    %c0_i32_2 = arith.constant 0 : i32
    return %c0_i32, %c0_i32_0, %c0_i32_1 : i32, i32, i32
  }
  func.func @transform_8(%arg0: i32) -> (i32, i32) {
    %c0_i32 = arith.constant 0 : i32
    %c0_i32_0 = arith.constant 0 : i32
    %c0_i32_1 = arith.constant 0 : i32
    return %c0_i32, %c0_i32_0 : i32, i32
  }
  func.func @transform_9(%arg0: i32) -> (i32, i32) {
    %c0_i32 = arith.constant 0 : i32
    %c0_i32_0 = arith.constant 0 : i32
    %c0_i32_1 = arith.constant 0 : i32
    return %c0_i32, %c0_i32_0 : i32, i32
  }
  func.func @transform_10(%arg0: i32) -> (i32, i32) {
    %c0_i32 = arith.constant 0 : i32
    %c0_i32_0 = arith.constant 0 : i32
    %c0_i32_1 = arith.constant 0 : i32
    return %c0_i32, %c0_i32_0 : i32, i32
  }
  func.func @transform_11(%arg0: i32) -> (i32, i32) {
    %c0_i32 = arith.constant 0 : i32
    %c0_i32_0 = arith.constant 0 : i32
    %c0_i32_1 = arith.constant 0 : i32
    return %c0_i32, %c0_i32_0 : i32, i32
  }
  func.func @transform_12(%arg0: i32) -> (i32, i32, i32) {
    %c0_i32 = arith.constant 0 : i32
    %c0_i32_0 = arith.constant 0 : i32
    %c0_i32_1 = arith.constant 0 : i32
    return %arg0, %c0_i32, %c0_i32_0 : i32, i32, i32
  }
}

</mosaic_0001>

<bundles_post_ra>
// kernel: _lambda_.1
= control target key start
LH: loop header
LB: loop body
LE: loop exit
PB: predicated region body
PF: predicated region fallthrough
CT: control target
= control target key end

     0   :  { %17 = vsyncpa [#allocation3], 0  ;;  %s4044_s0 = inlined_call_operand.vmem [shape: f32[2,1,32], index: 0, kind: input, shape index: {}]   ;;  %s4045_s1 = inlined_call_operand.hbm [shape: bf16[32,512], index: 1, kind: input, shape index: {}]   ;;  %s4046_s2 = inlined_call_operand.vmem [shape: bf16[128,512], index: 2, kind: input, shape index: {}]   ;;  %s4047_s3 = inlined_call_operand.vmem [shape: f32[4,8,4], index: 3, kind: input, shape index: {}]   ;;  %s4048_s4 = inlined_call_operand.hbm [shape: bf16[128,512], index: 4, kind: input, shape index: {}]   ;;  %s4049_s5 = inlined_call_operand.vmem [shape: f32[4,16,8], index: 5, kind: input, shape index: {}]   ;;  %s4050_s6 = inlined_call_operand.hbm [shape: bf16[128,1024], index: 6, kind: input, shape index: {}]   ;;  %s4051_s7 = inlined_call_operand.vmem [shape: f32[4,32,16], index: 7, kind: input, shape index: {}]   ;;  %s4052_s8 = inlined_call_operand.vmem [shape: f32[1,128], index: 8, kind: input, shape index: {}]   ;;  %s4053_s9 = inlined_call_operand.vmem [shape: f32[1,128], index: 9, kind: input, shape index: {}]   ;;  %s4054_s10 = inlined_call_operand.vmem [shape: f32[1,128], index: 10, kind: input, shape index: {}]   ;;  %s4055_s11 = inlined_call_operand.vmem [shape: f32[1,256], index: 11, kind: input, shape index: {}]   ;;  %s4056_s12 = inlined_call_operand.vmem [shape: f32[2,32,256], index: 12, kind: output, shape index: {}]  }
   0x1   :  { %18 = vsyncpa [#allocation5], 0  ;;  %s3630_s21 = smov 0  }
   0x2 LB: > { %4058 = sst [smem:[#allocation9_spill]] %s3553_s21  ;;  %s3636_s22 = sadd.s32 4294967295, %s3553_s21   ;;  %s3553_s21 = sphi %s3630_s21, %s24_s21  }
   0x3   : > { %p2971_p0 = scmp.ge.s32.totalorder %s3553_s21, 1  ;;  %p312_p1 = scmp.lt.s32.totalorder %s3553_s21, 3 }
   0x4   : > { %p3307_p2 = scmp.eq.s32.totalorder %s3636_s22, 0  ;;  %s3555_s24 = smov [#allocation4]  }
   0x5   : > { %p3641_p3 = pnand %p2971_p0, %p312_p1  ;;  %s343_s25 = sshll.u32 %s3555_s24, 4  ;;  %s3645_s25 = int_to_ptr.vmem [resolvable:$true] %s343_s25 }
   0x6   : > { %s3556_s26 = smov [#allocation2]   ;;  %s3557_s29 = smov [#allocation6]  }
   0x7   : > { %p3297_p4 = pneg %p3641_p3  ;;  %s324_s27 = sshll.u32 %s3556_s26, 4  ;;  %s3649_s27 = int_to_ptr.vmem [resolvable:$true] %s324_s27 }
   0x8   : > { %s359_s30 = sshll.u32 %s3557_s29, 4  ;;  %s3455_s15 = scalar_lea.hbm %s4048_s4, 4096  ;;  %s3657_s30 = int_to_ptr.vmem [resolvable:$true] %s359_s30 }
   0x9   : > { %p3653_p5 = pnand %p3307_p2, %p3297_p4  ;;  %p3456_p6 = scmp.ne.s32.totalorder %s4048_s4, %s3455_s15 }
   0xa   : > { %p3462_p10 = scmp.lt.u32.totalorder %s3455_s15, %s4048_s4 }
   0xb   : > { %p3667_p7 = pneg %p3653_p5 }
   0xd   : > { %p3458_p8 = pnand %p3667_p7, %p3456_p6 }
   0xf   : > { %p3459_p9 = pneg %p3458_p8 }
  0x11   : > { %p3464_p11 = pnand %p3462_p10, %p3459_p9 }
  0x13   : > { %3467 = shalt.err (!%p3464_p11)
}
  0x14   : > { %s3468_s24 = scalar_lea.vmem %s3645_s25, 4096  ;;  %p3476_p1 = scmp.lt.s32.totalorder %s3645_s25, %s3645_s25 }
  0x15   : > { %p3469_p12 = scmp.ne.s32.totalorder %s3645_s25, %s3468_s24  ;;  %p3477_p4 = scmp.lt.s32.totalorder %s3468_s24, %s3468_s24 }
  0x17   : > { %p3471_p13 = pnand %p3469_p12, %p3667_p7  ;;  %p3478_p6 = por %p3477_p4, %p3476_p1 }
  0x19   : > { %p3472_p0 = pneg %p3471_p13 }
  0x1b   : > { %p3479_p8 = pnand %p3478_p6, %p3472_p0 }
  0x1d   : > { %3482 = shalt.err (!%p3479_p8)
}
  0x1e   : > { %s3558_s26 = smov 256   ;;  %s3559_s29 = smov 16  }
  0x1f   : > { %3303 = dma.hbm_to_vmem [thread:$0]  (!%p3653_p5), %s4048_s4, 4096, %s3645_s25, [#allocation5], %s3558_s26, %s3558_s26, %s3559_s29  }
  0x20   : > { %s3483_s17 = scalar_lea.hbm %s4045_s1, 1024 }
  0x21   : > { %p3484_p9 = scmp.ne.s32.totalorder %s4045_s1, %s3483_s17  ;;  %p3490_p12 = scmp.lt.u32.totalorder %s3483_s17, %s4045_s1 }
  0x23   : > { %p3486_p10 = pnand %p3484_p9, %p3667_p7 }
  0x25   : > { %p3487_p11 = pneg %p3486_p10 }
  0x27   : > { %p3492_p13 = pnand %p3490_p12, %p3487_p11 }
  0x29   : > { %3495 = shalt.err (!%p3492_p13)
}
  0x2a   : > { %s3496_s25 = scalar_lea.vmem %s3649_s27, 1024  ;;  %p3504_p6 = scmp.lt.s32.totalorder %s3649_s27, %s3649_s27 }
  0x2b   : > { %p3497_p0 = scmp.ne.s32.totalorder %s3649_s27, %s3496_s25  ;;  %p3505_p8 = scmp.lt.s32.totalorder %s3496_s25, %s3496_s25 }
  0x2d   : > { %p3499_p1 = pnand %p3497_p0, %p3667_p7  ;;  %p3506_p9 = por %p3505_p8, %p3504_p6 }
  0x2f   : > { %p3500_p4 = pneg %p3499_p1 }
  0x31   : > { %p3507_p10 = pnand %p3506_p9, %p3500_p4 }
  0x33   : > { %3510 = shalt.err (!%p3507_p10)
}
  0x34   : > { %3300 = dma.hbm_to_vmem [thread:$0]  (!%p3653_p5), %s4045_s1, 1024, %s3649_s27, [#allocation3], %s3558_s26, %s3558_s26, %s3559_s29  }
  0x35   : > { %s3511_s16 = scalar_lea.hbm %s4050_s6, 8192 }
  0x36   : > { %p3512_p11 = scmp.ne.s32.totalorder %s4050_s6, %s3511_s16  ;;  %p3518_p0 = scmp.lt.u32.totalorder %s3511_s16, %s4050_s6 }
  0x38   : > { %p3514_p12 = pnand %p3512_p11, %p3667_p7 }
  0x3a   : > { %p3515_p13 = pneg %p3514_p12 }
  0x3c   : > { %p3520_p1 = pnand %p3518_p0, %p3515_p13 }
  0x3e   : > { %3523 = shalt.err (!%p3520_p1)
}
  0x3f   : > { %s3524_s27 = scalar_lea.vmem %s3657_s30, 8192  ;;  %p3532_p9 = scmp.lt.s32.totalorder %s3657_s30, %s3657_s30 }
  0x40   : > { %p3525_p4 = scmp.ne.s32.totalorder %s3657_s30, %s3524_s27  ;;  %p3533_p10 = scmp.lt.s32.totalorder %s3524_s27, %s3524_s27 }
  0x42   : > { %p3527_p6 = pnand %p3525_p4, %p3667_p7  ;;  %p3534_p11 = por %p3533_p10, %p3532_p9 }
  0x44   : > { %p3528_p8 = pneg %p3527_p6 }
  0x46   : > { %p3535_p12 = pnand %p3534_p11, %p3528_p8 }
  0x48   : > { %3538 = shalt.err (!%p3535_p12)
}
  0x49   : > { %s3560_s26 = smov 512   ;;  %s3561_s29 = smov 32  }
  0x4a   : > { %3306 = dma.hbm_to_vmem [thread:$0]  (!%p3653_p5), %s4050_s6, 8192, %s3657_s30, [#allocation5], %s3560_s26, %s3560_s26, %s3561_s29  }
  0x4b   : > { %396 = sbr.rel (%p3641_p3) target bundleno = 1736 (0x6c8), region = 68 }
  0x52   : > { %3544 = dma.done.wait (%p3307_p2), [#allocation3], 1024  }
  0x53   : > { %3546 = vsyncadd (%p3307_p2), [#allocation3], 4294966272 }
  0x54   : > { %3548 = dma.done.wait (%p3307_p2), [#allocation5], 12288  }
  0x55   : > { %3550 = vsyncadd (%p3307_p2), [#allocation5], 4294955008  ;;  %p444_p7 = scmp.lt.s32.totalorder %s3636_s22, 1  ;;  %v3562_v0 = vmov 0   ;;  %v3331_v1 = vld [vmem:[#allocation2 + $0x4] ss:$16 sps:$4 sm:$0xff]   ;;  %v589_v43 = vlaneseq }
  0x56   : > { %539 = vmatprep.mubr.bf16.mxu0 %v3562_v0  ;;  %894 = vmatprep.mubr.bf16.mxu1 %v3562_v0  ;;  %v3333_v2 = vld [vmem:[#allocation2] ss:$16 sps:$4 sm:$0xff]   ;;  %v3334_v3 = vld [vmem:[#allocation2 + $0x24] ss:$16 sps:$4 sm:$0xff]   ;;  %v3339_v6 = vld [vmem:[#allocation2 + $0xc] ss:$16 sps:$4 sm:$0xff]  }
  0x57   : > { %s4064_s22 = smov (!%p444_p7, %s3636_s22), 1  ;;  %507 = vmatprep.subr.bf16.mxu0 %v3331_v1  ;;  %v3336_v4 = vld [vmem:[#allocation2 + $0x20] ss:$16 sps:$4 sm:$0xff]   ;;  %v3337_v8 = vld [vmem:[#allocation2 + $0x8] ss:$16 sps:$4 sm:$0xff]   ;;  %vm503_vm0 = vcmask 261120  }
  0x58   : > { %s446_s30 = scalar_lea.vmem %s4044_s0, %s4064_s22  ;;  %508 = vmatpush1.bf16.msra.mxu0 %v3333_v2  ;;  %v3342_v9 = vld [vmem:[#allocation2 + $0x2c] ss:$16 sps:$4 sm:$0xff]   ;;  %v3348_v11 = vld [vmem:[%s4046_s2 + $0x8] ss:$16 sps:$4 sm:$0xff]   ;;  %v3345_v15 = vld [vmem:[%s4046_s2 + $0x4] ss:$16 sps:$4 sm:$0xff]  }
  0x59   : > { %v453_v5 = vld [vmem:[%s446_s30] sm:$0x1]  ;;  %509 = vmatprep.subr.bf16.mxu0 %v3334_v3  ;;  %v3346_v10 = vld [vmem:[%s4046_s2 + $0xc] ss:$16 sps:$4 sm:$0xff]   ;;  %v3354_v13 = vld [vmem:[%s4046_s2 + $0x28] ss:$16 sps:$4 sm:$0xff]  }
  0x5a   : > { %v454_v7 = vpack.c.bf16 %v453_v5, %v453_v5  ;;  %862 = vmatprep.subr.bf16.mxu1 %v3346_v10  ;;  %v3352_v12 = vld [vmem:[%s4046_s2 + $0x2c] ss:$16 sps:$4 sm:$0xff]   ;;  %v3340_v14 = vld [vmem:[#allocation2 + $0x28] ss:$16 sps:$4 sm:$0xff]   ;;  %v3343_v16 = vld [vmem:[%s4046_s2] ss:$16 sps:$4 sm:$0xff]  }
  0x5b   : > { %863 = vmatpush1.bf16.msra.mxu1 %v3348_v11  ;;  %v3358_v17 = vld [vmem:[%s4046_s2 + $0x4c] ss:$16 sps:$4 sm:$0xff]   ;;  %v3360_v18 = vld [vmem:[%s4046_s2 + $0x48] ss:$16 sps:$4 sm:$0xff]   ;;  %v3351_v19 = vld [vmem:[%s4046_s2 + $0x24] ss:$16 sps:$4 sm:$0xff]  }
  0x5c   : > { %510 = vmatpush1.bf16.msra.mxu0 %v3336_v4  ;;  %864 = vmatprep.subr.bf16.mxu1 %v3352_v12  ;;  %v3349_v20 = vld [vmem:[%s4046_s2 + $0x20] ss:$16 sps:$4 sm:$0xff]   ;;  %v3357_v21 = vld [vmem:[%s4046_s2 + $0x44] ss:$16 sps:$4 sm:$0xff]   ;;  %v3364_v24 = vld [vmem:[%s4046_s2 + $0x6c] ss:$16 sps:$4 sm:$0xff]  }
  0x5d   : > { %548 = vmatprep.subr.bf16.mxu0 %v3339_v6  ;;  %v3355_v22 = vld [vmem:[%s4046_s2 + $0x40] ss:$16 sps:$4 sm:$0xff]   ;;  %v3363_v23 = vld [vmem:[%s4046_s2 + $0x64] ss:$16 sps:$4 sm:$0xff]   ;;  %v3366_v26 = vld [vmem:[%s4046_s2 + $0x68] ss:$16 sps:$4 sm:$0xff]  }
  0x5e   : > { %v3361_v25 = vld [vmem:[%s4046_s2 + $0x60] ss:$16 sps:$4 sm:$0xff]   ;;  %v3369_v27 = vld [vmem:[%s4046_s2 + $0x84] ss:$16 sps:$4 sm:$0xff]   ;;  %v3370_v28 = vld [vmem:[%s4046_s2 + $0x8c] ss:$16 sps:$4 sm:$0xff]  }
  0x5f   : > { %2990 = vmatmul.mubr.msk.bf16.vlgmr.msra.gmra.mrb[0].mxu0 %vm503_vm0, %v454_v7  ;;  %865 = vmatpush1.bf16.msra.mxu1 %v3354_v13  ;;  %v3367_v29 = vld [vmem:[%s4046_s2 + $0x80] ss:$16 sps:$4 sm:$0xff]   ;;  %v3372_v30 = vld [vmem:[%s4046_s2 + $0x88] ss:$16 sps:$4 sm:$0xff]   ;;  %v3375_v31 = vld [vmem:[%s4046_s2 + $0xa4] ss:$16 sps:$4 sm:$0xff]  }
  0x60   : > { %549 = vmatpush1.bf16.msra.mxu0 %v3337_v8  ;;  %580 = vmatprep.mubr.bf16.mxu0 %v3562_v0  ;;  %v3376_v32 = vld [vmem:[%s4046_s2 + $0xac] ss:$16 sps:$4 sm:$0xff]   ;;  %v3373_v33 = vld [vmem:[%s4046_s2 + $0xa0] ss:$16 sps:$4 sm:$0xff]   ;;  %v3378_v34 = vld [vmem:[%s4046_s2 + $0xa8] ss:$16 sps:$4 sm:$0xff]  }
  0x61   : > { %550 = vmatprep.subr.bf16.mxu0 %v3342_v9  ;;  %866 = vmatprep.subr.bf16.mxu1 %v3358_v17  ;;  %v3381_v35 = vld [vmem:[%s4046_s2 + $0xc4] ss:$16 sps:$4 sm:$0xff]   ;;  %v3382_v36 = vld [vmem:[%s4046_s2 + $0xcc] ss:$16 sps:$4 sm:$0xff]   ;;  %v3379_v37 = vld [vmem:[%s4046_s2 + $0xc0] ss:$16 sps:$4 sm:$0xff]  }
  0x62   : > { %v3384_v38 = vld [vmem:[%s4046_s2 + $0xc8] ss:$16 sps:$4 sm:$0xff]   ;;  %v3387_v39 = vld [vmem:[%s4046_s2 + $0xe4] ss:$16 sps:$4 sm:$0xff]   ;;  %v3388_v40 = vld [vmem:[%s4046_s2 + $0xec] ss:$16 sps:$4 sm:$0xff]  }
  0x63   : > { %867 = vmatpush1.bf16.msra.mxu1 %v3360_v18  ;;  %v3385_v41 = vld [vmem:[%s4046_s2 + $0xe0] ss:$16 sps:$4 sm:$0xff]   ;;  %v3390_v42 = vld [vmem:[%s4046_s2 + $0xe8] ss:$16 sps:$4 sm:$0xff]   ;;  %v3854_v44 = vshrl.u32 %v589_v43, 7  ;;  %v3563_v6 = vmov 0.0  }
  0x64   : > { %551 = vmatpush1.bf16.msra.mxu0 %v3340_v14  ;;  %868 = vmatprep.subr.bf16.mxu1 %v3364_v24  ;;  %v2992_v1 = vld [vmem:[%s4052_s8] ss:$0 sm:$0xff]  ;;  %vm3564_vm5 = vmmov 0   ;;  %vm910_vm6 = vcmask 1043456   ;;  %v3025_v9 = vld [vmem:[%s4047_s3 + $0x8] sm:$0xff]  ;;  %vm906_vm7 = vcmask 31744  }
  0x65   : > { %821 = vmatprep.subr.bf16.mxu0 %v3345_v15  ;;  %v3857_v45 = vsub.s32 0, %v3854_v44  ;;  %vm591_vm1 = vcmp.eq.s32.totalorder %v3854_v44, 0  ;;  %vm598_vm2 = vcmp.eq.s32.totalorder %v3854_v44, 1  ;;  %vm605_vm3 = vcmp.eq.s32.totalorder %v3854_v44, 2  ;;  %v903_v10 = vld [vmem:[%s4047_s3] sm:$0xff]  ;;  %v3030_v18 = vld [vmem:[%s4047_s3 + $0x10] sm:$0xff] }
  0x66   : > { %vm612_vm4 = vcmp.eq.s32.totalorder %v3854_v44, 3  ;;  %v3393_v15 = vld [vmem:[#allocation4 + $0x4] ss:$16 sps:$4 sm:$0xff]   ;;  %v3402_v24 = vld [vmem:[#allocation4 + $0x2c] ss:$16 sps:$4 sm:$0xff]   ;;  %vm1507_vm8 = vcmask 64512  }
  0x67   : > { %2991 = vmatmul.mubr.msk.bf16.vlgmr.msra.gmra.mrb[4].mxu0 %vm503_vm0, %v454_v7  ;;  %869 = vmatpush1.bf16.msra.mxu1 %v3366_v26  ;;  %v3400_v26 = vld [vmem:[#allocation4 + $0x28] ss:$16 sps:$4 sm:$0xff]   ;;  %v3429_v43 = vld [vmem:[#allocation4 + $0xc4] ss:$16 sps:$4 sm:$0xff]   ;;  %vm2419_vm9 = vcmask 130048   ;;  %s3178_s27 = sshll.u32 %s4064_s22, 6 }
  0x68   : > { %822 = vmatpush1.bf16.msra.mxu0 %v3343_v16  ;;  %853 = vmatprep.mubr.bf16.mxu0 %v3562_v0  ;;  %s451_s25 = scalar_lea.vmem %s4056_s12, %s3178_s27 }
  0x69   : > { %823 = vmatprep.subr.bf16.mxu0 %v3351_v19  ;;  %870 = vmatprep.subr.bf16.mxu1 %v3370_v28  ;;  %v3033_v19 = vld [vmem:[%s4047_s3 + $0x18] sm:$0xff] }
  0x6a   : > { %v3408_v28 = vld [vmem:[#allocation4 + $0x4c] ss:$16 sps:$4 sm:$0xff]  }
  0x6b   : > { %871 = vmatpush1.bf16.msra.mxu1 %v3372_v30  ;;  %v3406_v30 = vld [vmem:[#allocation4 + $0x48] ss:$16 sps:$4 sm:$0xff]  }
  0x6c   : > { %824 = vmatpush1.bf16.msra.mxu0 %v3349_v20  ;;  %872 = vmatprep.subr.bf16.mxu1 %v3376_v32  ;;  %v3391_v20 = vld [vmem:[#allocation4] ss:$16 sps:$4 sm:$0xff]   ;;  %v3414_v32 = vld [vmem:[#allocation4 + $0x6c] ss:$16 sps:$4 sm:$0xff]  }
  0x6d   : > { %825 = vmatprep.subr.bf16.mxu0 %v3357_v21  ;;  %v3396_v21 = vld [vmem:[#allocation4 + $0xc] ss:$16 sps:$4 sm:$0xff]  }
  0x6f   : > { %873 = vmatpush1.bf16.msra.mxu1 %v3378_v34  ;;  %v3412_v34 = vld [vmem:[#allocation4 + $0x68] ss:$16 sps:$4 sm:$0xff]  }
  0x70   : > { %826 = vmatpush1.bf16.msra.mxu0 %v3355_v22  ;;  %874 = vmatprep.subr.bf16.mxu1 %v3382_v36  ;;  %v3394_v22 = vld [vmem:[#allocation4 + $0x8] ss:$16 sps:$4 sm:$0xff]   ;;  %v3420_v36 = vld [vmem:[#allocation4 + $0x8c] ss:$16 sps:$4 sm:$0xff]  }
  0x71   : > { %827 = vmatprep.subr.bf16.mxu0 %v3363_v23  ;;  %v3399_v23 = vld [vmem:[#allocation4 + $0x24] ss:$16 sps:$4 sm:$0xff]  }
  0x73   : > { %875 = vmatpush1.bf16.msra.mxu1 %v3384_v38  ;;  %v3418_v38 = vld [vmem:[#allocation4 + $0x88] ss:$16 sps:$4 sm:$0xff]  }
  0x74   : > { %828 = vmatpush1.bf16.msra.mxu0 %v3361_v25  ;;  %876 = vmatprep.subr.bf16.mxu1 %v3388_v40  ;;  %v3397_v25 = vld [vmem:[#allocation4 + $0x20] ss:$16 sps:$4 sm:$0xff]   ;;  %v3423_v40 = vld [vmem:[#allocation4 + $0xa4] ss:$16 sps:$4 sm:$0xff]  }
  0x75   : > { %829 = vmatprep.subr.bf16.mxu0 %v3369_v27  ;;  %v3405_v27 = vld [vmem:[#allocation4 + $0x44] ss:$16 sps:$4 sm:$0xff]  }
  0x77   : > { %877 = vmatpush1.bf16.msra.mxu1 %v3390_v42  ;;  %v3426_v42 = vld [vmem:[#allocation4 + $0xac] ss:$16 sps:$4 sm:$0xff]  }
  0x78   : > { %830 = vmatpush1.bf16.msra.mxu0 %v3367_v29  ;;  %3204 = vmatprep.subr.mxu1 %v3563_v6  ;;  %v3403_v29 = vld [vmem:[#allocation4 + $0x40] ss:$16 sps:$4 sm:$0xff]  }
  0x79   : > { %831 = vmatprep.subr.bf16.mxu0 %v3375_v31  ;;  %v3411_v31 = vld [vmem:[#allocation4 + $0x64] ss:$16 sps:$4 sm:$0xff]  }
  0x7c   : > { %832 = vmatpush1.bf16.msra.mxu0 %v3373_v33  ;;  %v3409_v33 = vld [vmem:[#allocation4 + $0x60] ss:$16 sps:$4 sm:$0xff]  }
  0x7d   : > { %833 = vmatprep.subr.bf16.mxu0 %v3381_v35  ;;  %v3417_v35 = vld [vmem:[#allocation4 + $0x84] ss:$16 sps:$4 sm:$0xff]  }
  0x80   : > { %834 = vmatpush1.bf16.msra.mxu0 %v3379_v37  ;;  %v3415_v37 = vld [vmem:[#allocation4 + $0x80] ss:$16 sps:$4 sm:$0xff]  }
  0x81   : > { %835 = vmatprep.subr.bf16.mxu0 %v3387_v39  ;;  %v3421_v39 = vld [vmem:[#allocation4 + $0xa0] ss:$16 sps:$4 sm:$0xff]  }
  0x84   : > { %836 = vmatpush1.bf16.msra.mxu0 %v3385_v41  ;;  %v3424_v41 = vld [vmem:[#allocation4 + $0xa8] ss:$16 sps:$4 sm:$0xff]  }
  0x85   : > { %3199 = vmatprep.subr.mxu0 %v3563_v6 }
 0x132   : > { %v541_v46 = vpop.f32.mrb[0].mxu0 }
 0x133   : > { %v595_v47 = vrot.slane %v541_v46, %v3857_v45  ;;  %v543_v48 = vpop.f32.mrb[1].mxu0  ;;  %v3432_v46 = vld [vmem:[#allocation4 + $0xcc] ss:$16 sps:$4 sm:$0xff]  }
 0x134   : > { %v602_v49 = vrot.slane %v543_v48, %v3857_v45  ;;  %v545_v50 = vpop.f32.mrb[2].mxu0  ;;  %v3430_v48 = vld [vmem:[#allocation4 + $0xc8] ss:$16 sps:$4 sm:$0xff]  }
 0x135   : > { %v596_v51 = vsel %vm591_vm1, %v595_v47, 0.0  ;;  %v546_v52 = vpop.f32.mrb[3].mxu0  ;;  %v3427_v47 = vld [vmem:[#allocation4 + $0xc0] ss:$16 sps:$4 sm:$0xff]   ;;  %v3438_v50 = vld [vmem:[#allocation4 + $0xec] ss:$16 sps:$4 sm:$0xff]  }
 0x136   : > { %v603_v53 = vsel %vm598_vm2, %v602_v49, 0.0  ;;  %v3435_v49 = vld [vmem:[#allocation4 + $0xe4] ss:$16 sps:$4 sm:$0xff]   ;;  %v3436_v52 = vld [vmem:[#allocation4 + $0xe8] ss:$16 sps:$4 sm:$0xff]  }
 0x137   : > { %v604_v54 = vadd.f32 %v603_v53, %v596_v51  ;;  %v3433_v51 = vld [vmem:[#allocation4 + $0xe0] ss:$16 sps:$4 sm:$0xff]  }
 0x13a   : > { %v582_v55 = vpop.f32.mrb[4].mxu0 }
 0x13b   : > { %v609_v56 = vrot.slane %v582_v55, %v3857_v45  ;;  %v584_v57 = vpop.f32.mrb[5].mxu0 }
 0x13c   : > { %v616_v58 = vrot.slane %v584_v57, %v3857_v45  ;;  %v586_v59 = vpop.f32.mrb[6].mxu0 }
 0x13d   : > { %v610_v60 = vsel %vm605_vm3, %v609_v56, 0.0  ;;  %v587_v61 = vpop.f32.mrb[7].mxu0 }
 0x13e   : > { %v611_v62 = vadd.f32 %v610_v60, %v604_v54  ;;  %v617_v63 = vsel %vm612_vm4, %v616_v58, 0.0 }
 0x140   : > { %v618_v2 = vadd.f32 %v617_v63, %v611_v62  ;;  %v3036_v63 = vld [vmem:[%s4053_s9] ss:$0 sm:$0xff] }
 0x142   : > { %v626_v3 = vadd.f32 %v2992_v1, %v618_v2 }
 0x144   : > { %v627_v4 = vmax.f32 %v626_v3, 0.0 }
 0x146   : > { %v628_v5 = vpack.c.bf16 %v627_v4, %v627_v4 }
 0x148   : > { %854 = vmatmul.mubr.bf16.vlgmr.msra.gmra.mrb[8].mxu0 %v628_v5  ;;  %895 = vmatmul.mubr.bf16.vlgmr.msra.gmra.mrb[0].mxu1 %v628_v5  ;;  %v3069_v5 = vld [vmem:[%s4049_s5 + $0x10] sm:$0xff] }
 0x149   : > { %3201 = vmatprep.mubr.msk.f32.mxu0 %vm3564_vm5, %v3563_v6  ;;  %3206 = vmatprep.mubr.msk.f32.mxu1 %vm3564_vm5, %v3563_v6 }
 0x21b   : > { %v855_v7 = vpop.f32.mrb[8].mxu0  ;;  %v896_v8 = vpop.f32.mrb[0].mxu1 }
 0x21c   : > { %v857_v11 = vpop.f32.mrb[9].mxu0  ;;  %v898_v12 = vpop.f32.mrb[1].mxu1  ;;  %3205 = vmatpush3.msk.msra.mxu1 %vm910_vm6, %v855_v7  ;;  %v1854_v7 = vld [vmem:[#allocation6] sm:$0xff] }
 0x21d   : > { %v859_v13 = vpop.f32.mrb[10].mxu0  ;;  %v900_v14 = vpop.f32.mrb[2].mxu1  ;;  %3200 = vmatpush3.msk.msra.mxu0 %vm910_vm6, %v857_v11  ;;  %3214 = vmatprep.subr.mxu1 %v3563_v6  ;;  %v1862_v11 = vld [vmem:[#allocation6 + $0x40] sm:$0xff] }
 0x21e   : > { %v860_v16 = vpop.f32.mrb[11].mxu0  ;;  %v901_v17 = vpop.f32.mrb[3].mxu1  ;;  %3202 = vmatmul.mubr.msk.f32.vlgmr.msra.gmra.mrb[12].mxu0 %vm906_vm7, %v3025_v9  ;;  %3207 = vmatmul.mubr.msk.f32.vlgmr.msra.gmra.mrb[4].mxu1 %vm906_vm7, %v903_v10 }
 0x21f   : > { %3209 = vmatprep.subr.mxu0 %v3563_v6  ;;  %3215 = vmatpush3.msk.msra.mxu1 %vm910_vm6, %v898_v12  ;;  %v1866_v12 = vld [vmem:[#allocation6 + $0x60] sm:$0xff] }
 0x220   : > { %3210 = vmatpush3.msk.msra.mxu0 %vm910_vm6, %v896_v8  ;;  %3211 = vmatprep.mubr.msk.f32.mxu0 %vm3564_vm5, %v3563_v6  ;;  %v1858_v8 = vld [vmem:[#allocation6 + $0x20] sm:$0xff]  ;;  %v3093_v13 = vcombine.high %v1862_v11, %v1866_v12  ;;  %v3092_v14 = vcombine.low %v1862_v11, %v1866_v12 }
 0x221   : > { %3216 = vmatprep.mubr.msk.f32.mxu1 %vm3564_vm5, %v3563_v6  ;;  %1420 = vmatprep.subr.bf16.mxu0 %v3393_v15  ;;  %v3084_v9 = vcombine.low %v1854_v7, %v1858_v8  ;;  %v3085_v10 = vcombine.high %v1854_v7, %v1858_v8  ;;  %v1870_v15 = vld [vmem:[#allocation6 + $0x80] sm:$0xff] }
 0x222   : > { %3212 = vmatmul.mubr.msk.f32.vlgmr.msra.gmra.mrb[14].mxu0 %vm906_vm7, %v3030_v18  ;;  %3217 = vmatmul.mubr.msk.f32.vlgmr.msra.gmra.mrb[6].mxu1 %vm906_vm7, %v3033_v19  ;;  %v1874_v16 = vld [vmem:[#allocation6 + $0xa0] sm:$0xff] }
 0x223   : > { %1461 = vmatprep.subr.bf16.mxu1 %v3396_v21  ;;  %1421 = vmatpush1.bf16.msra.mxu0 %v3391_v20  ;;  %v3101_v17 = vcombine.high %v1870_v15, %v1874_v16  ;;  %v3100_v18 = vcombine.low %v1870_v15, %v1874_v16  ;;  %v1878_v19 = vld [vmem:[#allocation6 + $0xc0] sm:$0xff] }
 0x224   : > { %1462 = vmatpush1.bf16.msra.mxu1 %v3394_v22  ;;  %1422 = vmatprep.subr.bf16.mxu0 %v3399_v23  ;;  %v1882_v20 = vld [vmem:[#allocation6 + $0xe0] sm:$0xff] }
 0x225   : > { %1463 = vmatprep.subr.bf16.mxu1 %v3402_v24  ;;  %1452 = vmatprep.mubr.bf16.mxu0 %v3562_v0  ;;  %v3109_v21 = vcombine.high %v1878_v19, %v1882_v20  ;;  %v3108_v22 = vcombine.low %v1878_v19, %v1882_v20  ;;  %v1886_v23 = vld [vmem:[#allocation6 + $0x100] sm:$0xff]  ;;  %v1911_v20 = vld [vmem:[#allocation6 + $0x1c8] sm:$0xff] }
 0x226   : > { %1493 = vmatprep.mubr.bf16.mxu1 %v3562_v0  ;;  %v1890_v24 = vld [vmem:[#allocation6 + $0x120] sm:$0xff] }
 0x227   : > { %1423 = vmatpush1.bf16.msra.mxu0 %v3397_v25  ;;  %v3117_v25 = vcombine.high %v1886_v23, %v1890_v24  ;;  %v1914_v19 = vld [vmem:[#allocation6 + $0x1e0] sm:$0xff] }
 0x228   : > { %1464 = vmatpush1.bf16.msra.mxu1 %v3400_v26  ;;  %1424 = vmatprep.subr.bf16.mxu0 %v3405_v27  ;;  %v3116_v26 = vcombine.low %v1886_v23, %v1890_v24  ;;  %v1894_v27 = vld [vmem:[#allocation6 + $0x140] sm:$0xff] }
 0x229   : > { %1465 = vmatprep.subr.bf16.mxu1 %v3408_v28  ;;  %v1898_v28 = vld [vmem:[#allocation6 + $0x160] sm:$0xff] }
 0x22b   : > { %1425 = vmatpush1.bf16.msra.mxu0 %v3403_v29  ;;  %v3125_v29 = vcombine.high %v1894_v27, %v1898_v28 }
 0x22c   : > { %1466 = vmatpush1.bf16.msra.mxu1 %v3406_v30  ;;  %1426 = vmatprep.subr.bf16.mxu0 %v3411_v31  ;;  %v3124_v30 = vcombine.low %v1894_v27, %v1898_v28  ;;  %v1902_v31 = vld [vmem:[#allocation6 + $0x180] sm:$0xff]  ;;  %v1860_v27 = vld [vmem:[#allocation6 + $0x30] sm:$0xff]  ;;  %v1857_v28 = vld [vmem:[#allocation6 + $0x18] sm:$0xff] }
 0x22d   : > { %1467 = vmatprep.subr.bf16.mxu1 %v3414_v32  ;;  %v1906_v32 = vld [vmem:[#allocation6 + $0x1a0] sm:$0xff] }
 0x22f   : > { %1427 = vmatpush1.bf16.msra.mxu0 %v3409_v33  ;;  %v3133_v33 = vcombine.high %v1902_v31, %v1906_v32 }
 0x230   : > { %1468 = vmatpush1.bf16.msra.mxu1 %v3412_v34  ;;  %1428 = vmatprep.subr.bf16.mxu0 %v3417_v35  ;;  %v3132_v34 = vcombine.low %v1902_v31, %v1906_v32  ;;  %v1861_v31 = vld [vmem:[#allocation6 + $0x38] sm:$0xff] }
 0x231   : > { %1469 = vmatprep.subr.bf16.mxu1 %v3420_v36  ;;  %v3090_v32 = vcombine.low %v1857_v28, %v1861_v31 }
 0x233   : > { %1429 = vmatpush1.bf16.msra.mxu0 %v3415_v37 }
 0x234   : > { %1470 = vmatpush1.bf16.msra.mxu1 %v3418_v38  ;;  %1430 = vmatprep.subr.bf16.mxu0 %v3423_v40 }
 0x235   : > { %1471 = vmatprep.subr.bf16.mxu1 %v3426_v42  ;;  %v1502_v42 = vld [vmem:[%s4049_s5] sm:$0xff] }
 0x237   : > { %1431 = vmatpush1.bf16.msra.mxu0 %v3421_v39  ;;  %v3070_v39 = vld [vmem:[%s4049_s5 + $0x18] sm:$0xff] }
 0x238   : > { %1472 = vmatpush1.bf16.msra.mxu1 %v3424_v41  ;;  %1432 = vmatprep.subr.bf16.mxu0 %v3429_v43 }
 0x239   : > { %1473 = vmatprep.subr.bf16.mxu1 %v3432_v46 }
 0x23b   : > { %1433 = vmatpush1.bf16.msra.mxu0 %v3427_v47  ;;  %v1503_v47 = vld [vmem:[%s4049_s5 + $0x8] sm:$0xff] }
 0x23c   : > { %1474 = vmatpush1.bf16.msra.mxu1 %v3430_v48  ;;  %1434 = vmatprep.subr.bf16.mxu0 %v3435_v49  ;;  %v3075_v48 = vld [vmem:[%s4049_s5 + $0x20] sm:$0xff]  ;;  %v1855_v49 = vld [vmem:[#allocation6 + $0x8] sm:$0xff] }
 0x23d   : > { %1475 = vmatprep.subr.bf16.mxu1 %v3438_v50  ;;  %v1859_v50 = vld [vmem:[#allocation6 + $0x28] sm:$0xff] }
 0x23f   : > { %1435 = vmatpush1.bf16.msra.mxu0 %v3433_v51  ;;  %v3076_v51 = vld [vmem:[%s4049_s5 + $0x28] sm:$0xff] }
 0x240   : > { %1476 = vmatpush1.bf16.msra.mxu1 %v3436_v52  ;;  %v3079_v52 = vld [vmem:[%s4049_s5 + $0x30] sm:$0xff] }
 0x241   : > { %2238 = vmatprep.subr.bf16.mxu1 %v3085_v10  ;;  %v1899_v10 = vld [vmem:[#allocation6 + $0x168] sm:$0xff] }
 0x2f1   : > { %v980_v53 = vpop.f32.mrb[12].mxu0  ;;  %v1056_v54 = vpop.f32.mrb[4].mxu1 }
 0x2f2   : > { %v1057_v55 = vadd.f32 %v1056_v54, %v980_v53  ;;  %v3203_v56 = vpop.f32.mrb[13].mxu0  ;;  %v3208_v57 = vpop.f32.mrb[5].mxu1  ;;  %v3087_v53 = vcombine.high %v1855_v49, %v1859_v50  ;;  %v1863_v54 = vld [vmem:[#allocation6 + $0x48] sm:$0xff] }
 0x2f3   : > { %v3080_v56 = vld [vmem:[%s4049_s5 + $0x38] sm:$0xff]  ;;  %v3086_v57 = vcombine.low %v1855_v49, %v1859_v50  ;;  %v1872_v50 = vld [vmem:[#allocation6 + $0x90] sm:$0xff] }
 0x2f5   : > { %v1134_v58 = vpop.f32.mrb[14].mxu0  ;;  %v1213_v59 = vpop.f32.mrb[6].mxu1 }
 0x2f6   : > { %v1138_v60 = vadd.f32 %v1134_v58, %v1057_v55  ;;  %v3213_v61 = vpop.f32.mrb[15].mxu0  ;;  %v3218_v62 = vpop.f32.mrb[7].mxu1  ;;  %v1867_v55 = vld [vmem:[#allocation6 + $0x68] sm:$0xff] }
 0x2f7   : > { %v3095_v58 = vcombine.high %v1863_v54, %v1867_v55  ;;  %v3094_v61 = vcombine.low %v1863_v54, %v1867_v55 }
 0x2f8   : > { %v1217_v1 = vadd.f32 %v1213_v59, %v1138_v60  ;;  %v1871_v59 = vld [vmem:[#allocation6 + $0x88] sm:$0xff] }
 0x2f9   : > { %v1875_v60 = vld [vmem:[#allocation6 + $0xa8] sm:$0xff] }
 0x2fa   : > { %v1225_v2 = vadd.f32 %v3036_v63, %v1217_v1  ;;  %v3103_v62 = vcombine.high %v1871_v59, %v1875_v60  ;;  %v1879_v63 = vld [vmem:[#allocation6 + $0xc8] sm:$0xff] }
 0x2fb   : > { %v1883_v1 = vld [vmem:[#allocation6 + $0xe8] sm:$0xff] }
 0x2fc   : > { %v1226_v3 = vmax.f32 %v1225_v2, 0.0  ;;  %v3102_v2 = vcombine.low %v1871_v59, %v1875_v60  ;;  %v3110_v7 = vcombine.low %v1879_v63, %v1883_v1  ;;  %v1884_v59 = vld [vmem:[#allocation6 + $0xf0] sm:$0xff]  ;;  %v1881_v60 = vld [vmem:[#allocation6 + $0xd8] sm:$0xff] }
 0x2fe   : > { %v1227_v4 = vpack.c.bf16 %v1226_v3, %v1226_v3  ;;  %v3111_v3 = vcombine.high %v1879_v63, %v1883_v1 }
 0x300   : > { %1453 = vmatmul.mubr.bf16.vlgmr.msra.gmra.mrb[16].mxu0 %v1227_v4  ;;  %1494 = vmatmul.mubr.bf16.vlgmr.msra.gmra.mrb[8].mxu1 %v1227_v4  ;;  %v1887_v4 = vld [vmem:[#allocation6 + $0x108] sm:$0xff] }
 0x301   : > { %2270 = vmatprep.mubr.bf16.mxu1 %v3562_v0  ;;  %3221 = vmatprep.mubr.msk.f32.mxu0 %vm1507_vm8, %v3069_v5  ;;  %v1891_v5 = vld [vmem:[#allocation6 + $0x128] sm:$0xff] }
 0x302   : > { %2239 = vmatpush1.bf16.msra.mxu1 %v3084_v9  ;;  %v3119_v8 = vcombine.high %v1887_v4, %v1891_v5  ;;  %v1895_v9 = vld [vmem:[#allocation6 + $0x148] sm:$0xff]  ;;  %v3118_v11 = vcombine.low %v1887_v4, %v1891_v5  ;;  %v1892_v4 = vld [vmem:[#allocation6 + $0x130] sm:$0xff]  ;;  %v1889_v5 = vld [vmem:[#allocation6 + $0x118] sm:$0xff] }
 0x303   : > { %2240 = vmatprep.subr.bf16.mxu1 %v3093_v13  ;;  %v3127_v12 = vcombine.high %v1895_v9, %v1899_v10  ;;  %v1903_v13 = vld [vmem:[#allocation6 + $0x188] sm:$0xff]  ;;  %v3126_v15 = vcombine.low %v1895_v9, %v1899_v10 }
 0x306   : > { %2241 = vmatpush1.bf16.msra.mxu1 %v3092_v14  ;;  %v1907_v14 = vld [vmem:[#allocation6 + $0x1a8] sm:$0xff] }
 0x307   : > { %2242 = vmatprep.subr.bf16.mxu1 %v3101_v17  ;;  %v3135_v16 = vcombine.high %v1903_v13, %v1907_v14  ;;  %v3134_v17 = vcombine.low %v1903_v13, %v1907_v14  ;;  %v1897_v13 = vld [vmem:[#allocation6 + $0x158] sm:$0xff] }
 0x308   : > { %v1901_v14 = vld [vmem:[#allocation6 + $0x178] sm:$0xff] }
 0x30a   : > { %2243 = vmatpush1.bf16.msra.mxu1 %v3100_v18  ;;  %v1910_v18 = vld [vmem:[#allocation6 + $0x1c0] sm:$0xff] }
 0x30b   : > { %2244 = vmatprep.subr.bf16.mxu1 %v3109_v21  ;;  %v3141_v21 = vcombine.high %v1910_v18, %v1914_v19  ;;  %v3140_v23 = vcombine.low %v1910_v18, %v1914_v19  ;;  %v3131_v18 = vcombine.high %v1897_v13, %v1901_v14  ;;  %v1904_v19 = vld [vmem:[#allocation6 + $0x190] sm:$0xff] }
 0x30e   : > { %2245 = vmatpush1.bf16.msra.mxu1 %v3108_v22  ;;  %v1915_v22 = vld [vmem:[#allocation6 + $0x1e8] sm:$0xff] }
 0x30f   : > { %2246 = vmatprep.subr.bf16.mxu1 %v3117_v25  ;;  %v3142_v24 = vcombine.low %v1911_v20, %v1915_v22  ;;  %v3143_v25 = vcombine.high %v1911_v20, %v1915_v22  ;;  %v1908_v20 = vld [vmem:[#allocation6 + $0x1b0] sm:$0xff]  ;;  %v1909_v22 = vld [vmem:[#allocation6 + $0x1b8] sm:$0xff] }
 0x312   : > { %2247 = vmatpush1.bf16.msra.mxu1 %v3116_v26  ;;  %v1856_v26 = vld [vmem:[#allocation6 + $0x10] sm:$0xff] }
 0x313   : > { %2248 = vmatprep.subr.bf16.mxu1 %v3125_v29  ;;  %v3088_v29 = vcombine.low %v1856_v26, %v1860_v27 }
 0x316   : > { %2249 = vmatpush1.bf16.msra.mxu1 %v3124_v30  ;;  %v3089_v30 = vcombine.high %v1856_v26, %v1860_v27  ;;  %v1912_v27 = vld [vmem:[#allocation6 + $0x1d0] sm:$0xff] }
 0x317   : > { %2250 = vmatprep.subr.bf16.mxu1 %v3133_v33  ;;  %v3091_v33 = vcombine.high %v1857_v28, %v1861_v31  ;;  %v1916_v28 = vld [vmem:[#allocation6 + $0x1f0] sm:$0xff]  ;;  %v3136_v31 = vcombine.low %v1904_v19, %v1908_v20 }
 0x31a   : > { %2251 = vmatpush1.bf16.msra.mxu1 %v3132_v34  ;;  %v3083_v34 = vld [vmem:[%s4054_s10] ss:$0 sm:$0xff] }
 0x31b   : > { %2252 = vmatprep.subr.bf16.mxu1 %v3141_v21  ;;  %v1905_v21 = vld [vmem:[#allocation6 + $0x198] sm:$0xff] }
 0x31c   : > { %v3139_v26 = vcombine.high %v1905_v21, %v1909_v22 }
 0x31e   : > { %2253 = vmatpush1.bf16.msra.mxu1 %v3140_v23 }
 0x31f   : > { %2324 = vmatprep.subr.bf16.mxu1 %v3089_v30  ;;  %v1917_v30 = vld [vmem:[#allocation6 + $0x1f8] sm:$0xff] }
 0x3d3   : > { %v1454_v35 = vpop.f32.mrb[16].mxu0  ;;  %v1495_v36 = vpop.f32.mrb[8].mxu1 }
 0x3d4   : > { %v1456_v37 = vpop.f32.mrb[17].mxu0  ;;  %v1497_v38 = vpop.f32.mrb[9].mxu1 }
 0x3d5   : > { %v1458_v40 = vpop.f32.mrb[18].mxu0  ;;  %v1499_v41 = vpop.f32.mrb[10].mxu1  ;;  %3219 = vmatprep.subr.mxu0 %v1456_v37 }
 0x3d6   : > { %v1459_v43 = vpop.f32.mrb[19].mxu0  ;;  %v1500_v46 = vpop.f32.mrb[11].mxu1  ;;  %3220 = vmatpush3.msra.mxu0 %v1456_v37  ;;  %v1868_v41 = vld [vmem:[#allocation6 + $0x70] sm:$0xff] }
 0x3d7   : > { %3222 = vmatmul.mubr.msk.f32.vlgmr.msra.gmra.mrb[20].mxu0 %vm1507_vm8, %v3070_v39  ;;  %3224 = vmatprep.subr.mxu0 %v1454_v35  ;;  %v1864_v39 = vld [vmem:[#allocation6 + $0x50] sm:$0xff]  ;;  %v1869_v43 = vld [vmem:[#allocation6 + $0x78] sm:$0xff] }
 0x3d8   : > { %3225 = vmatpush3.msra.mxu0 %v1454_v35  ;;  %3226 = vmatprep.mubr.msk.f32.mxu0 %vm1507_vm8, %v1502_v42  ;;  %v1865_v42 = vld [vmem:[#allocation6 + $0x58] sm:$0xff]  ;;  %v3096_v54 = vcombine.low %v1864_v39, %v1868_v41 }
 0x3d9   : > { %3229 = vmatprep.subr.mxu0 %v1495_v36  ;;  %v3099_v49 = vcombine.high %v1865_v42, %v1869_v43  ;;  %v3098_v55 = vcombine.low %v1865_v42, %v1869_v43 }
 0x3df   : > { %3227 = vmatmul.mubr.msk.f32.vlgmr.msra.gmra.mrb[20].mxu0 %vm1507_vm8, %v1503_v47 }
 0x3e0   : > { %3230 = vmatpush3.msra.mxu0 %v1495_v36  ;;  %3231 = vmatprep.mubr.msk.f32.mxu0 %vm1507_vm8, %v3075_v48  ;;  %v3097_v48 = vcombine.high %v1864_v39, %v1868_v41 }
 0x3e1   : > { %3234 = vmatprep.subr.mxu0 %v1497_v38 }
 0x3e7   : > { %3232 = vmatmul.mubr.msk.f32.vlgmr.msra.gmra.mrb[20].mxu0 %vm1507_vm8, %v3076_v51  ;;  %v1876_v51 = vld [vmem:[#allocation6 + $0xb0] sm:$0xff] }
 0x3e8   : > { %3235 = vmatpush3.msra.mxu0 %v1497_v38  ;;  %3236 = vmatprep.mubr.msk.f32.mxu0 %vm1507_vm8, %v3079_v52  ;;  %v1873_v52 = vld [vmem:[#allocation6 + $0x98] sm:$0xff] }
 0x3e9   : > { %2281 = vmatprep.subr.bf16.mxu0 %v3087_v53  ;;  %v1877_v53 = vld [vmem:[#allocation6 + $0xb8] sm:$0xff] }
 0x3ea   : > { %v3106_v63 = vcombine.low %v1873_v52, %v1877_v53 }
 0x3ef   : > { %3237 = vmatmul.mubr.msk.f32.vlgmr.msra.gmra.mrb[20].mxu0 %vm1507_vm8, %v3080_v56  ;;  %v3105_v56 = vcombine.high %v1872_v50, %v1876_v51 }
 0x3f0   : > { %2282 = vmatpush1.bf16.msra.mxu0 %v3086_v57  ;;  %2313 = vmatprep.mubr.bf16.mxu0 %v3562_v0  ;;  %v3107_v57 = vcombine.high %v1873_v52, %v1877_v53  ;;  %v3148_v52 = vld [vmem:[%s4051_s7 + $0x20] sm:$0xff]  ;;  %v2411_v53 = vld [vmem:[%s4051_s7 + $0x8] sm:$0xff] }
 0x3f1   : > { %2283 = vmatprep.subr.bf16.mxu0 %v3095_v58  ;;  %v1880_v58 = vld [vmem:[#allocation6 + $0xd0] sm:$0xff] }
 0x3f2   : > { %v3113_v1 = vcombine.high %v1880_v58, %v1884_v59 }
 0x3f4   : > { %2284 = vmatpush1.bf16.msra.mxu0 %v3094_v61  ;;  %v1885_v61 = vld [vmem:[#allocation6 + $0xf8] sm:$0xff] }
 0x3f5   : > { %2285 = vmatprep.subr.bf16.mxu0 %v3103_v62  ;;  %v3104_v62 = vcombine.low %v1872_v50, %v1876_v51  ;;  %v3114_v9 = vcombine.low %v1881_v60, %v1885_v61 }
 0x3f8   : > { %2286 = vmatpush1.bf16.msra.mxu0 %v3102_v2  ;;  %v3115_v2 = vcombine.high %v1881_v60, %v1885_v61 }
 0x3f9   : > { %2287 = vmatprep.subr.bf16.mxu0 %v3111_v3  ;;  %v1888_v3 = vld [vmem:[#allocation6 + $0x110] sm:$0xff] }
 0x3fa   : > { %v3121_v10 = vcombine.high %v1888_v3, %v1892_v4 }
 0x3fc   : > { %2288 = vmatpush1.bf16.msra.mxu0 %v3110_v7  ;;  %v1893_v7 = vld [vmem:[#allocation6 + $0x138] sm:$0xff] }
 0x3fd   : > { %2289 = vmatprep.subr.bf16.mxu0 %v3119_v8  ;;  %v3112_v8 = vcombine.low %v1880_v58, %v1884_v59  ;;  %v3151_v58 = vld [vmem:[%s4051_s7 + $0x38] sm:$0xff] }
 0x400   : > { %2290 = vmatpush1.bf16.msra.mxu0 %v3118_v11  ;;  %v1896_v11 = vld [vmem:[#allocation6 + $0x150] sm:$0xff] }
 0x401   : > { %2291 = vmatprep.subr.bf16.mxu0 %v3127_v12  ;;  %v1900_v12 = vld [vmem:[#allocation6 + $0x170] sm:$0xff] }
 0x402   : > { %v3128_v23 = vcombine.low %v1896_v11, %v1900_v12 }
 0x404   : > { %2292 = vmatpush1.bf16.msra.mxu0 %v3126_v15  ;;  %v3120_v15 = vcombine.low %v1888_v3, %v1892_v4 }
 0x405   : > { %2293 = vmatprep.subr.bf16.mxu0 %v3135_v16  ;;  %v3122_v16 = vcombine.low %v1889_v5, %v1893_v7 }
 0x408   : > { %2294 = vmatpush1.bf16.msra.mxu0 %v3134_v17  ;;  %v3129_v17 = vcombine.high %v1896_v11, %v1900_v12  ;;  %v3163_v11 = vld [vmem:[%s4051_s7 + $0x58] sm:$0xff]  ;;  %v3168_v12 = vld [vmem:[%s4051_s7 + $0x60] sm:$0xff] }
 0x409   : > { %2295 = vmatprep.subr.bf16.mxu0 %v3143_v25  ;;  %v3137_v25 = vcombine.high %v1904_v19, %v1908_v20 }
 0x40c   : > { %2296 = vmatpush1.bf16.msra.mxu0 %v3142_v24  ;;  %v3130_v24 = vcombine.low %v1897_v13, %v1901_v14  ;;  %v3169_v13 = vld [vmem:[%s4051_s7 + $0x68] sm:$0xff]  ;;  %v3170_v14 = vld [vmem:[%s4051_s7 + $0x70] sm:$0xff] }
 0x40d   : > { %2367 = vmatprep.subr.bf16.mxu0 %v3091_v33  ;;  %v3145_v33 = vcombine.high %v1912_v27, %v1916_v28 }
 0x4c2   : > { %v3238_v35 = vpop.f32.mrb[20].mxu0 }
 0x4c3   : > { %v1850_v36 = vadd.f32 %v3238_v35, %v3083_v34  ;;  %v1831_v37 = vpop.f32.mrb[21].mxu0  ;;  %v3144_v35 = vcombine.low %v1912_v27, %v1916_v28 }
 0x4c4   : > { %v1849_v38 = vadd.f32 %v3083_v34, %v1831_v37 }
 0x4c5   : > { %v1852_v40 = vmax.f32 %v1850_v36, 0.0 }
 0x4c6   : > { %v1851_v46 = vmax.f32 %v1849_v38, 0.0 }
 0x4c8   : > { %v3944_v47 = vpack.c.bf16 %v1852_v40, %v1851_v46 }
 0x4ca   : > { %2271 = vmatmul.mubr.bf16.vlgmr.msra.gmra.mrb[12].mxu1 %v3944_v47  ;;  %2314 = vmatmul.mubr.bf16.vlgmr.msra.gmra.mrb[24].mxu0 %v3944_v47 }
 0x4cb   : > { %2325 = vmatpush1.bf16.msra.mxu1 %v3088_v29  ;;  %2368 = vmatpush1.bf16.msra.mxu0 %v3090_v32  ;;  %v1913_v29 = vld [vmem:[#allocation6 + $0x1d8] sm:$0xff]  ;;  %v3138_v32 = vcombine.low %v1905_v21, %v1909_v22 }
 0x4cc   : > { %2326 = vmatprep.subr.bf16.mxu1 %v3097_v48  ;;  %2369 = vmatprep.subr.bf16.mxu0 %v3099_v49  ;;  %v3147_v34 = vcombine.high %v1913_v29, %v1917_v30  ;;  %v3146_v36 = vcombine.low %v1913_v29, %v1917_v30 }
 0x4cd   : > { %2356 = vmatprep.mubr.bf16.mxu1 %v3562_v0  ;;  %2399 = vmatprep.mubr.bf16.mxu0 %v3562_v0  ;;  %v3123_v0 = vcombine.high %v1889_v5, %v1893_v7 }
 0x4cf   : > { %2327 = vmatpush1.bf16.msra.mxu1 %v3096_v54  ;;  %2370 = vmatpush1.bf16.msra.mxu0 %v3098_v55  ;;  %v3149_v54 = vld [vmem:[%s4051_s7 + $0x28] sm:$0xff]  ;;  %v2412_v55 = vld [vmem:[%s4051_s7 + $0x10] sm:$0xff] }
 0x4d0   : > { %2328 = vmatprep.subr.bf16.mxu1 %v3105_v56  ;;  %2371 = vmatprep.subr.bf16.mxu0 %v3107_v57  ;;  %v3150_v56 = vld [vmem:[%s4051_s7 + $0x30] sm:$0xff]  ;;  %v2413_v57 = vld [vmem:[%s4051_s7 + $0x18] sm:$0xff] }
 0x4d3   : > { %2329 = vmatpush1.bf16.msra.mxu1 %v3104_v62  ;;  %2372 = vmatpush1.bf16.msra.mxu0 %v3106_v63 }
 0x4d4   : > { %2330 = vmatprep.subr.bf16.mxu1 %v3113_v1  ;;  %2373 = vmatprep.subr.bf16.mxu0 %v3115_v2 }
 0x4d7   : > { %2331 = vmatpush1.bf16.msra.mxu1 %v3112_v8  ;;  %2374 = vmatpush1.bf16.msra.mxu0 %v3114_v9  ;;  %v3160_v9 = vld [vmem:[%s4051_s7 + $0x40] sm:$0xff] }
 0x4d8   : > { %2332 = vmatprep.subr.bf16.mxu1 %v3121_v10  ;;  %2375 = vmatprep.subr.bf16.mxu0 %v3123_v0  ;;  %v3161_v10 = vld [vmem:[%s4051_s7 + $0x48] sm:$0xff]  ;;  %v3162_v0 = vld [vmem:[%s4051_s7 + $0x50] sm:$0xff] }
 0x4db   : > { %2333 = vmatpush1.bf16.msra.mxu1 %v3120_v15  ;;  %2376 = vmatpush1.bf16.msra.mxu0 %v3122_v16  ;;  %v3171_v15 = vld [vmem:[%s4051_s7 + $0x78] sm:$0xff] }
 0x4dc   : > { %2334 = vmatprep.subr.bf16.mxu1 %v3129_v17  ;;  %2377 = vmatprep.subr.bf16.mxu0 %v3131_v18 }
 0x4df   : > { %2335 = vmatpush1.bf16.msra.mxu1 %v3128_v23  ;;  %2378 = vmatpush1.bf16.msra.mxu0 %v3130_v24  ;;  %v2850_v24 = vld [vmem:[%s4055_s11] sm:$0x3] }
 0x4e0   : > { %2336 = vmatprep.subr.bf16.mxu1 %v3137_v25  ;;  %2379 = vmatprep.subr.bf16.mxu0 %v3139_v26  ;;  %v2855_v25 = vrot.slane %v2850_v24, %v3857_v45 }
 0x4e3   : > { %2337 = vmatpush1.bf16.msra.mxu1 %v3136_v31  ;;  %2380 = vmatpush1.bf16.msra.mxu0 %v3138_v32 }
 0x4e4   : > { %2338 = vmatprep.subr.bf16.mxu1 %v3145_v33  ;;  %2381 = vmatprep.subr.bf16.mxu0 %v3147_v34 }
 0x4e7   : > { %2339 = vmatpush1.bf16.msra.mxu1 %v3144_v35  ;;  %2382 = vmatpush1.bf16.msra.mxu0 %v3146_v36 }
 0x4ea   : > { %2357 = vmatmul.mubr.bf16.vlgmr.msra.gmra.mrb[16].mxu1 %v3944_v47  ;;  %2400 = vmatmul.mubr.bf16.vlgmr.msra.gmra.mrb[28].mxu0 %v3944_v47  ;;  %v2410_v47 = vld [vmem:[%s4051_s7] sm:$0xff] }
 0x4eb   : > { %2597 = vmatprep.mubr.f32.mxu1 %v3563_v6  ;;  %2496 = vmatprep.mubr.f32.mxu0 %v3563_v6 }
 0x59d   : > { %v2272_v37 = vpop.f32.mrb[12].mxu1  ;;  %v2315_v38 = vpop.f32.mrb[24].mxu0 }
 0x59e   : > { %v2274_v39 = vpop.f32.mrb[13].mxu1  ;;  %v2317_v40 = vpop.f32.mrb[25].mxu0 }
 0x59f   : > { %v2276_v41 = vpop.f32.mrb[14].mxu1  ;;  %v2319_v42 = vpop.f32.mrb[26].mxu0 }
 0x5a0   : > { %v3245_v43 = vpack.c.bf16 %v2276_v41, %v2272_v37  ;;  %v3241_v46 = vpack.c.bf16 %v2319_v42, %v2315_v38  ;;  %v2278_v48 = vpop.f32.mrb[15].mxu1  ;;  %v2321_v49 = vpop.f32.mrb[27].mxu0 }
 0x5a1   : > { %v3243_v50 = vpack.c.bf16 %v2278_v48, %v2274_v39  ;;  %v3239_v51 = vpack.c.bf16 %v2321_v49, %v2317_v40 }
 0x5a3   : > { %3240 = vmatprep.subr.bf16.mxu0 %v3239_v51  ;;  %3244 = vmatprep.subr.bf16.mxu1 %v3243_v50 }
 0x5a4   : > { %3242 = vmatpush1.bf16.msra.mxu0 %v3241_v46  ;;  %3246 = vmatpush1.bf16.msra.mxu1 %v3245_v43 }
 0x5a7   : > { %3156 = vmatmul.mubr.msk.f32.vlgmr.msra.gmra.mrb[20].mxu1 %vm2419_vm9, %v2410_v47  ;;  %3152 = vmatmul.mubr.msk.f32.vlgmr.msra.gmra.mrb[22].mxu0 %vm2419_vm9, %v3148_v52 }
 0x5a8   : > { %2603 = vmatprep.mubr.f32.mxu1 %v3563_v6  ;;  %2502 = vmatprep.mubr.f32.mxu0 %v3563_v6 }
 0x5ab   : > { %3157 = vmatmul.mubr.msk.f32.gmra.mrb[22].mxu1 %vm2419_vm9, %v2411_v53  ;;  %3153 = vmatmul.mubr.msk.f32.gmra.mrb[32].mxu0 %vm2419_vm9, %v3149_v54 }
 0x5ac   : > { %2609 = vmatprep.mubr.f32.mxu1 %v3563_v6  ;;  %2508 = vmatprep.mubr.f32.mxu0 %v3563_v6 }
 0x5af   : > { %3158 = vmatmul.mubr.msk.f32.gmra.mrb[24].mxu1 %vm2419_vm9, %v2412_v55  ;;  %3154 = vmatmul.mubr.msk.f32.gmra.mrb[34].mxu0 %vm2419_vm9, %v3150_v56 }
 0x5b0   : > { %2615 = vmatprep.mubr.f32.mxu1 %v3563_v6  ;;  %2514 = vmatprep.mubr.f32.mxu0 %v3563_v6 }
 0x5b3   : > { %3159 = vmatmul.mubr.msk.f32.gmra.mrb[26].mxu1 %vm2419_vm9, %v2413_v57  ;;  %3155 = vmatmul.mubr.msk.f32.gmra.mrb[36].mxu0 %vm2419_vm9, %v3151_v58 }
 0x5b4   : > { %2703 = vmatprep.mubr.f32.mxu1 %v3563_v6 }
 0x5bd   : > { %v2358_v59 = vpop.f32.mrb[16].mxu1  ;;  %v2401_v60 = vpop.f32.mrb[28].mxu0 }
 0x5be   : > { %v2360_v61 = vpop.f32.mrb[17].mxu1  ;;  %v2403_v62 = vpop.f32.mrb[29].mxu0 }
 0x5bf   : > { %v2362_v63 = vpop.f32.mrb[18].mxu1  ;;  %v2405_v1 = vpop.f32.mrb[30].mxu0 }
 0x5c0   : > { %v3249_v2 = vpack.c.bf16 %v2362_v63, %v2358_v59  ;;  %v3253_v3 = vpack.c.bf16 %v2405_v1, %v2401_v60  ;;  %v2364_v4 = vpop.f32.mrb[19].mxu1  ;;  %v2407_v5 = vpop.f32.mrb[31].mxu0 }
 0x5c1   : > { %v3247_v7 = vpack.c.bf16 %v2364_v4, %v2360_v61  ;;  %v3251_v8 = vpack.c.bf16 %v2407_v5, %v2403_v62 }
 0x5c3   : > { %3248 = vmatprep.subr.bf16.mxu1 %v3247_v7 }
 0x5c4   : > { %3250 = vmatpush1.bf16.msra.mxu1 %v3249_v2 }
 0x5c5   : > { %3252 = vmatprep.subr.bf16.mxu1 %v3251_v8 }
 0x5c7   : > { %3164 = vmatmul.mubr.msk.f32.vlgmr.msra.gmra.mrb[20].mxu1 %vm2419_vm9, %v3160_v9 }
 0x5c8   : > { %3254 = vmatpush1.bf16.msra.mxu1 %v3253_v3  ;;  %2709 = vmatprep.mubr.f32.mxu1 %v3563_v6 }
 0x5cb   : > { %3165 = vmatmul.mubr.msk.f32.gmra.mrb[22].mxu1 %vm2419_vm9, %v3161_v10 }
 0x5cc   : > { %2715 = vmatprep.mubr.f32.mxu1 %v3563_v6 }
 0x5cf   : > { %3166 = vmatmul.mubr.msk.f32.gmra.mrb[24].mxu1 %vm2419_vm9, %v3162_v0 }
 0x5d0   : > { %2721 = vmatprep.mubr.f32.mxu1 %v3563_v6 }
 0x5d3   : > { %3167 = vmatmul.mubr.msk.f32.gmra.mrb[26].mxu1 %vm2419_vm9, %v3163_v11 }
 0x5d4   : > { %2817 = vmatprep.mubr.f32.mxu1 %v3563_v6 }
 0x5d7   : > { %3172 = vmatmul.mubr.msk.f32.vlgmr.msra.gmra.mrb[20].mxu1 %vm2419_vm9, %v3168_v12 }
 0x5d8   : > { %2823 = vmatprep.mubr.f32.mxu1 %v3563_v6 }
 0x5db   : > { %3173 = vmatmul.mubr.msk.f32.gmra.mrb[22].mxu1 %vm2419_vm9, %v3169_v13 }
 0x5dc   : > { %2829 = vmatprep.mubr.f32.mxu1 %v3563_v6 }
 0x5df   : > { %3174 = vmatmul.mubr.msk.f32.gmra.mrb[24].mxu1 %vm2419_vm9, %v3170_v14 }
 0x5e0   : > { %2835 = vmatprep.mubr.f32.mxu1 %v3563_v6  ;;  %v2858_v6 = vsub.s32 1, %v3854_v44 }
 0x5e2   : > { %v2859_v27 = vrot.slane %v2850_v24, %v2858_v6 }
 0x5e3   : > { %3175 = vmatmul.mubr.msk.f32.gmra.mrb[26].mxu1 %vm2419_vm9, %v3171_v15 }
 0x67a   : > { %v2498_v16 = vpop.f32.mrb[22].mxu0 }
 0x67b   : > { %v2500_v17 = vpop.f32.mrb[23].mxu0 }
 0x67e   : > { %v2504_v18 = vpop.f32.mrb[32].mxu0 }
 0x67f   : > { %v2506_v19 = vpop.f32.mrb[33].mxu0 }
 0x682   : > { %v2510_v20 = vpop.f32.mrb[34].mxu0 }
 0x683   : > { %v2512_v21 = vpop.f32.mrb[35].mxu0 }
 0x686   : > { %v2516_v22 = vpop.f32.mrb[36].mxu0 }
 0x687   : > { %v2518_v23 = vpop.f32.mrb[37].mxu0 }
 0x6aa   : > { %v2819_v26 = vpop.f32.mrb[20].mxu1 }
 0x6ab   : > { %v3255_v28 = vadd.f32 %v2819_v26, %v2498_v16  ;;  %v2821_v29 = vpop.f32.mrb[21].mxu1 }
 0x6ac   : > { %v3256_v30 = vadd.f32 %v2821_v29, %v2500_v17 }
 0x6ad   : > { %v2862_v31 = vadd.f32 %v3255_v28, %v2855_v25 }
 0x6ae   : > { %v2863_v32 = vadd.f32 %v3256_v30, %v2859_v27  ;;  %v2825_v33 = vpop.f32.mrb[22].mxu1 }
 0x6af   : > { %3439 = vtanh.f32 %v2862_v31  ;;  %v3257_v34 = vadd.f32 %v2825_v33, %v2504_v18  ;;  %v2827_v35 = vpop.f32.mrb[23].mxu1 }
 0x6b0   : > { %3441 = vtanh.f32 %v2863_v32  ;;  %v3258_v36 = vadd.f32 %v2827_v35, %v2506_v19 }
 0x6b1   : > { %v2864_v37 = vadd.f32 %v3257_v34, %v2855_v25 }
 0x6b2   : > { %v2865_v38 = vadd.f32 %v3258_v36, %v2859_v27  ;;  %v2831_v39 = vpop.f32.mrb[24].mxu1 }
 0x6b3   : > { %3443 = vtanh.f32 %v2864_v37  ;;  %v3259_v44 = vadd.f32 %v2831_v39, %v2510_v20  ;;  %v2833_v45 = vpop.f32.mrb[25].mxu1 }
 0x6b4   : > { %3445 = vtanh.f32 %v2865_v38  ;;  %v3260_v40 = vadd.f32 %v2833_v45, %v2512_v21 }
 0x6b5   : > { %v2866_v41 = vadd.f32 %v3259_v44, %v2855_v25 }
 0x6b6   : > { %v2867_v42 = vadd.f32 %v3260_v40, %v2859_v27  ;;  %v2837_v43 = vpop.f32.mrb[26].mxu1 }
 0x6b7   : > { %3447 = vtanh.f32 %v2866_v41  ;;  %v3261_v46 = vadd.f32 %v2837_v43, %v2516_v22  ;;  %v2839_v48 = vpop.f32.mrb[27].mxu1 }
 0x6b8   : > { %3449 = vtanh.f32 %v2867_v42  ;;  %v3262_v49 = vadd.f32 %v2839_v48, %v2518_v23 }
 0x6b9   : > { %v3440_v50 = vpop.eup %3439  ;;  %v2868_v51 = vadd.f32 %v3261_v46, %v2855_v25 }
 0x6ba   : > { %v3442_v47 = vpop.eup %3441  ;;  %2878 = vst [vmem:[%s451_s25] sm:$0xff] %v3440_v50  ;;  %v2869_v52 = vadd.f32 %v3262_v49, %v2859_v27 }
 0x6bb   : > { %2879 = vst [vmem:[%s451_s25 + $0x8] sm:$0xff] %v3442_v47  ;;  %3451 = vtanh.f32 %v2868_v51 }
 0x6bc   : > { %3453 = vtanh.f32 %v2869_v52 }
 0x6bd   : > { %v3444_v53 = vpop.eup %3443 }
 0x6be   : > { %v3446_v54 = vpop.eup %3445  ;;  %2880 = vst [vmem:[%s451_s25 + $0x10] sm:$0xff] %v3444_v53 }
 0x6bf   : > { %2881 = vst [vmem:[%s451_s25 + $0x18] sm:$0xff] %v3446_v54 }
 0x6c1   : > { %v3448_v55 = vpop.eup %3447 }
 0x6c2   : > { %v3450_v56 = vpop.eup %3449  ;;  %2882 = vst [vmem:[%s451_s25 + $0x20] sm:$0xff] %v3448_v55 }
 0x6c3   : > { %2883 = vst [vmem:[%s451_s25 + $0x28] sm:$0xff] %v3450_v56 }
 0x6c5   : > { %v3452_v57 = vpop.eup %3451 }
 0x6c6   : > { %v3454_v58 = vpop.eup %3453  ;;  %2884 = vst [vmem:[%s451_s25 + $0x30] sm:$0xff] %v3452_v57 }
 0x6c7   : > { %2885 = vst [vmem:[%s451_s25 + $0x38] sm:$0xff] %v3454_v58 }
 0x6c8 PF: > { %s4062_s22 = sld [smem:[#allocation9_spill]] }
 0x6ce   : > { %s24_s21 = sadd.s32 1, %s4062_s22  }
 0x6cf   : > { %p21_p2 = scmp.ge.s32.totalorder %s24_s21, 4  }
 0x6d1   :  { %23 = sbr.rel (!%p21_p2) target bundleno = 2 (0x2), region = 120 }
 0x6d8   :  { %2907 = vsyncpa [#allocation3], 1 }
 0x6d9   :  { %2909 = vsyncpa [#allocation3 + $0x1], 1 }
 0x6da   :  { %2910 = vsyncpa [#allocation5], 1 }

</bundles_post_ra>
